<compile_context>
chip_gen: v7x
topology: tpu7x:2x2x1
jax: 0.10.0
libtpu: 0.0.40
codegen_flags: <defaults>
</compile_context>

<pallas_src>
import jax
import jax.numpy as jnp
from jax.experimental import pallas as pl
from jax.experimental.pallas import tpu as pltpu


def _bce_hd_kernel(label_ref, pred_row_ref, pred_col_ref, tgt_row_ref,
                   tgt_col_ref, d2_ref, bce_ref, hd_ref):
    del label_ref  # consumed by the index_maps (scalar prefetch), not the body
    BIG = jnp.float32(1e30)

    x_row = pred_row_ref[0, 0].astype(jnp.float32)   # (1, HW)  logits, lane-dense
    x_col = pred_col_ref[0, 0].astype(jnp.float32)   # (HW, 1)  logits, sublane side
    t_row = tgt_row_ref[0].astype(jnp.float32)       # (1, HW)
    t_col = tgt_col_ref[0].astype(jnp.float32)       # (HW, 1)
    d2 = d2_ref[...]                                 # (HW, HW) pairwise squared dists

    # ---------------- BCE with logits (lane-dense; mean taken in wrapper) ----
    bce = (jnp.maximum(x_row, 0.0) - x_row * t_row
           + jnp.log1p(jnp.exp(-jnp.abs(x_row))))
    bce_ref[0] = jnp.sum(bce, keepdims=True)

    # ------------- Hausdorff-DT term (alpha = 2 -> squared distance fields) --
    # Foreground masks, built once per grid step in both orientations.
    fg_pred_row = x_row > 0.0          # sigmoid(x) > 0.5  <=>  x > 0
    fg_pred_col = x_col > 0.0
    fg_tgt_row = t_row > 0.5
    fg_tgt_col = t_col > 0.5

    def xor_min_field2(fg_col, fg_row):
        # field^2 for pixel j = squared distance to the nearest pixel of the
        # opposite class: min_i d2[i, j] over {i : fg[i] != fg[j]}.  One
        # XOR-masked pass replaces the two complementary masked mins (fg ->
        # nearest bg, bg -> nearest fg) of edt(fg) + edt(~fg).  Degenerate
        # all-fg / all-bg masks -> empty set -> field = 0, mirroring
        # HausdorffDTLoss's all-zero field for empty masks.
        # TODO(synk): scipy's edt of an all-foreground mask (no background at
        # all) is a degenerate case; we define the distance as 0 there.
        masked = jnp.where(jnp.logical_xor(fg_col, fg_row), d2, BIG)
        m = jnp.min(masked, axis=0, keepdims=True)        # (1, HW) lane-dense
        return jnp.where(m >= BIG, 0.0, m)

    pred_field2 = xor_min_field2(fg_pred_col, fg_pred_row)
    tgt_field2 = xor_min_field2(fg_tgt_col, fg_tgt_row)

    pred_err = (jax.nn.sigmoid(x_row) - t_row) ** 2       # (1, HW) lane-dense
    hd_ref[0] = jnp.sum(pred_err * (pred_field2 + tgt_field2), keepdims=True)


def bce_hd_losses(pred, target, label):
    """Returns (bce_loss, hd_loss) as f32 scalars, computed in one Pallas kernel."""
    N, C, H, W = pred.shape
    HW = H * W

    # Free (metadata-only) reshapes; the per-ROI class selection happens in the
    # kernel's index_maps via the scalar-prefetched label.
    pred_row = pred.reshape(N, C, 1, HW)      # lane-dense logits per class
    pred_col = pred.reshape(N, C, HW, 1)      # sublane-side copy for the masks
    tgt_row = target.reshape(N, 1, HW)
    tgt_col = target.reshape(N, HW, 1)
    label = label.astype(jnp.int32)

    # Pairwise squared Euclidean distances between pixel centres (HW, HW).
    ys = jnp.repeat(jnp.arange(H, dtype=jnp.float32), W)            # (HW,)
    xs = jnp.tile(jnp.arange(W, dtype=jnp.float32), H)              # (HW,)
    d2 = ((ys[:, None] - ys[None, :]) ** 2
          + (xs[:, None] - xs[None, :]) ** 2).astype(jnp.float32)   # (HW, HW)

    # TODO(synk): for very large masks (HW >~ 2k, e.g. 56x56 on v7x's 64 MiB
    # VMEM) tile the min-reduction over a second ("arbitrary") grid axis with a
    # (TI, HW) d2 block instead of keeping the full (HW, HW) matrix resident.
    grid_spec = pltpu.PrefetchScalarGridSpec(
        num_scalar_prefetch=1,        # label lands in SMEM, feeds the index_maps
        grid=(N,),
        in_specs=[
            pl.BlockSpec((1, 1, 1, HW), lambda b, lbl: (b, lbl[b], 0, 0)),  # pred_row
            pl.BlockSpec((1, 1, HW, 1), lambda b, lbl: (b, lbl[b], 0, 0)),  # pred_col
            pl.BlockSpec((1, 1, HW), lambda b, lbl: (b, 0, 0)),             # tgt_row
            pl.BlockSpec((1, HW, 1), lambda b, lbl: (b, 0, 0)),             # tgt_col
            pl.BlockSpec((HW, HW), lambda b, lbl: (0, 0)),                  # pairwise d^2
        ],
        out_specs=[
            pl.BlockSpec((1, 1, 1), lambda b, lbl: (b, 0, 0)),   # per-ROI bce sum
            pl.BlockSpec((1, 1, 1), lambda b, lbl: (b, 0, 0)),   # per-ROI hd sum
        ],
    )

    bce_part, hd_part = pl.pallas_call(
        _bce_hd_kernel,
        out_shape=(jax.ShapeDtypeStruct((N, 1, 1), jnp.float32),
                   jax.ShapeDtypeStruct((N, 1, 1), jnp.float32)),
        grid_spec=grid_spec,
        compiler_params=pltpu.CompilerParams(
            dimension_semantics=("parallel",),
        ),
    )(label, pred_row, pred_col, tgt_row, tgt_col, d2)

    inv = jnp.float32(1.0 / (N * H * W))
    bce_loss = jnp.sum(bce_part) * inv
    hd_loss = jnp.sum(hd_part) * inv
    return bce_loss, hd_loss


class BCE_HD_Loss:
    """JAX/Pallas port of mmdet BCE_HD_Loss (forward only)."""

    def __init__(self, start_alpha, step_alpha, max_alpha, alpha_strategy):
        self.start_alpha = start_alpha
        self.step_alpha = step_alpha
        self.max_alpha = max_alpha
        self.alpha_strategy = alpha_strategy
        self.count_iter = 0

    def __call__(self, pred, target, label):
        bce_loss, hd_loss = bce_hd_losses(pred, target, label)
        cur_alpha = self.start_alpha + int(self.count_iter / 1120) * self.step_alpha
        if cur_alpha > self.max_alpha:
            cur_alpha = self.max_alpha
        if self.alpha_strategy in ("constant", "increase"):
            combine = bce_loss + cur_alpha * hd_loss
        elif self.alpha_strategy == "rebalance":
            combine = (1.0 - cur_alpha) * bce_loss + cur_alpha * hd_loss
        else:
            raise ValueError(f"unknown alpha_strategy: {self.alpha_strategy}")
        self.count_iter += 1
        return combine[None]   # mask_cross_entropy returns shape (1,)


if __name__ == "__main__":
    key = jax.random.PRNGKey(0)
    k_pred, k_tgt, k_lbl = jax.random.split(key, 3)

    N, C, H, W = 2, 4, 16, 16
    pred = jax.random.normal(k_pred, (N, C, H, W), dtype=jnp.float32)          # logits (NCHW)
    target = (jax.random.uniform(k_tgt, (N, H, W)) > 0.5).astype(jnp.float32)  # binary mask
    label = jax.random.randint(k_lbl, (N,), 0, C, dtype=jnp.int32)             # per-ROI class

    loss_mod = BCE_HD_Loss(start_alpha=0.1, step_alpha=0.05, max_alpha=0.9,
                           alpha_strategy="rebalance")
    out = loss_mod(pred, target, label)
    out = jax.block_until_ready(out)
    assert out.shape == (1,)
    print("KERNEL_OK")
</pallas_src>

<mosaic_0001>
module attributes {stable_mosaic.version = 11 : i64} {
  func.func @_bce_hd_kernel(%arg0: i32, %arg1: memref<2xi32, #tpu.memory_space<smem>>, %arg2: memref<1x1x1x256xf32, #tpu.memory_space<vmem>>, %arg3: memref<1x1x256x1xf32, #tpu.memory_space<vmem>>, %arg4: memref<1x1x256xf32, #tpu.memory_space<vmem>>, %arg5: memref<1x256x1xf32, #tpu.memory_space<vmem>>, %arg6: memref<256x256xf32, #tpu.memory_space<vmem>>, %arg7: memref<1x1x1xf32, #tpu.memory_space<vmem>>, %arg8: memref<1x1x1xf32, #tpu.memory_space<vmem>>) attributes {dimension_semantics = [#tpu.dimension_semantics<parallel>], iteration_bounds = array<i64: 2>, scalar_prefetch = 1 : i64, scratch_operands = 0 : i64, tpu.core_type = #tpu.core_type<tc>, window_params = [{transform_indices = @transform_0, window_bounds = array<i64: 1, 1, 1, 256>}, {transform_indices = @transform_1, window_bounds = array<i64: 1, 1, 256, 1>}, {transform_indices = @transform_2, window_bounds = array<i64: 1, 1, 256>}, {transform_indices = @transform_3, window_bounds = array<i64: 1, 256, 1>}, {pipeline_mode = #tpu.pipeline_mode<synchronous>, transform_indices = @transform_4, window_bounds = array<i64: 256, 256>}, {transform_indices = @transform_5, window_bounds = array<i64: 1, 1, 1>}, {transform_indices = @transform_6, window_bounds = array<i64: 1, 1, 1>}]} {
    %c0 = arith.constant 0 : index
    %c0_0 = arith.constant 0 : index
    %c0_1 = arith.constant 0 : index
    %c0_2 = arith.constant 0 : index
    %0 = vector.load %arg2[%c0, %c0_0, %c0_1, %c0_2] : memref<1x1x1x256xf32, #tpu.memory_space<vmem>>, vector<1x1x1x256xf32>
    %1 = vector.shape_cast %0 : vector<1x1x1x256xf32> to vector<1x256xf32>
    %c0_3 = arith.constant 0 : index
    %c0_4 = arith.constant 0 : index
    %c0_5 = arith.constant 0 : index
    %c0_6 = arith.constant 0 : index
    %2 = vector.load %arg3[%c0_3, %c0_4, %c0_5, %c0_6] : memref<1x1x256x1xf32, #tpu.memory_space<vmem>>, vector<1x1x256x1xf32>
    %3 = vector.shape_cast %2 : vector<1x1x256x1xf32> to vector<256x1xf32>
    %c0_7 = arith.constant 0 : index
    %c0_8 = arith.constant 0 : index
    %c0_9 = arith.constant 0 : index
    %4 = vector.load %arg4[%c0_7, %c0_8, %c0_9] : memref<1x1x256xf32, #tpu.memory_space<vmem>>, vector<1x1x256xf32>
    %5 = vector.shape_cast %4 : vector<1x1x256xf32> to vector<1x256xf32>
    %c0_10 = arith.constant 0 : index
    %c0_11 = arith.constant 0 : index
    %c0_12 = arith.constant 0 : index
    %6 = vector.load %arg5[%c0_10, %c0_11, %c0_12] : memref<1x256x1xf32, #tpu.memory_space<vmem>>, vector<1x256x1xf32>
    %7 = vector.shape_cast %6 : vector<1x256x1xf32> to vector<256x1xf32>
    %c0_13 = arith.constant 0 : index
    %c0_14 = arith.constant 0 : index
    %8 = vector.load %arg6[%c0_13, %c0_14] : memref<256x256xf32, #tpu.memory_space<vmem>>, vector<256x256xf32>
    %cst = arith.constant 0.000000e+00 : f32
    %9 = vector.broadcast %cst : f32 to vector<1x256xf32>
    %10 = arith.maximumf %1, %9 : vector<1x256xf32>
    %11 = arith.mulf %1, %5 : vector<1x256xf32>
    %12 = arith.subf %10, %11 : vector<1x256xf32>
    %13 = math.absf %1 : vector<1x256xf32>
    %cst_15 = arith.constant 0.000000e+00 : f32
    %14 = vector.broadcast %cst_15 : f32 to vector<1x256xf32>
    %15 = arith.subf %14, %13 : vector<1x256xf32>
    %16 = math.exp %15 : vector<1x256xf32>
    %17 = math.log1p %16 : vector<1x256xf32>
    %18 = arith.addf %12, %17 : vector<1x256xf32>
    %19 = vector.shape_cast %18 : vector<1x256xf32> to vector<1x1x256xf32>
    %cst_16 = arith.constant dense<0.000000e+00> : vector<1xf32>
    %20 = vector.multi_reduction <add>, %19, %cst_16 [1, 2] : vector<1x1x256xf32> to vector<1xf32>
    %21 = vector.shape_cast %20 : vector<1xf32> to vector<1x1x1xf32>
    %22 = vector.extract %21[0, 0, 0] : f32 from vector<1x1x1xf32>
    %23 = vector.broadcast %22 : f32 to vector<1x1xf32>
    %c0_17 = arith.constant 0 : index
    %c0_18 = arith.constant 0 : index
    %c0_19 = arith.constant 0 : index
    %24 = vector.load %arg7[%c0_17, %c0_18, %c0_19] : memref<1x1x1xf32, #tpu.memory_space<vmem>>, vector<1x1x1xf32>
    %25 = vector.shape_cast %24 : vector<1x1x1xf32> to vector<1x1xf32>
    %26 = vector.shape_cast %23 : vector<1x1xf32> to vector<1x1x1xf32>
    tpu.vector_store %arg7[%c0_17, %c0_18, %c0_19], %26 {strides = array<i32>} : memref<1x1x1xf32, #tpu.memory_space<vmem>>, vector<1x1x1xf32>,
    %cst_20 = arith.constant 0.000000e+00 : f32
    %27 = vector.broadcast %cst_20 : f32 to vector<1x256xf32>
    %28 = arith.cmpf ogt, %1, %27 : vector<1x256xf32>
    %cst_21 = arith.constant 0.000000e+00 : f32
    %29 = vector.broadcast %cst_21 : f32 to vector<256x1xf32>
    %30 = arith.cmpf ogt, %3, %29 : vector<256x1xf32>
    %cst_22 = arith.constant 5.000000e-01 : f32
    %31 = vector.broadcast %cst_22 : f32 to vector<1x256xf32>
    %32 = arith.cmpf ogt, %5, %31 : vector<1x256xf32>
    %cst_23 = arith.constant 5.000000e-01 : f32
    %33 = vector.broadcast %cst_23 : f32 to vector<256x1xf32>
    %34 = arith.cmpf ogt, %7, %33 : vector<256x1xf32>
    %35 = vector.broadcast %30 : vector<256x1xi1> to vector<256x256xi1>
    %36 = vector.broadcast %28 : vector<1x256xi1> to vector<256x256xi1>
    %37 = arith.xori %35, %36 : vector<256x256xi1>
    %cst_24 = arith.constant 1.000000e+30 : f32
    %38 = vector.broadcast %cst_24 : f32 to vector<256x256xf32>
    %39 = arith.select %37, %8, %38 : vector<256x256xi1>, vector<256x256xf32>
    %cst_25 = arith.constant dense<0x7F800000> : vector<256xf32>
    %40 = vector.multi_reduction <minimumf>, %39, %cst_25 [0] : vector<256x256xf32> to vector<256xf32>
    %41 = vector.shape_cast %40 : vector<256xf32> to vector<1x256xf32>
    %cst_26 = arith.constant 1.000000e+30 : f32
    %42 = vector.broadcast %cst_26 : f32 to vector<1x256xf32>
    %43 = arith.cmpf oge, %41, %42 : vector<1x256xf32>
    %cst_27 = arith.constant 0.000000e+00 : f32
    %44 = vector.broadcast %cst_27 : f32 to vector<1x256xf32>
    %45 = arith.select %43, %44, %41 : vector<1x256xi1>, vector<1x256xf32>
    %46 = vector.broadcast %34 : vector<256x1xi1> to vector<256x256xi1>
    %47 = vector.broadcast %32 : vector<1x256xi1> to vector<256x256xi1>
    %48 = arith.xori %46, %47 : vector<256x256xi1>
    %cst_28 = arith.constant 1.000000e+30 : f32
    %49 = vector.broadcast %cst_28 : f32 to vector<256x256xf32>
    %50 = arith.select %48, %8, %49 : vector<256x256xi1>, vector<256x256xf32>
    %cst_29 = arith.constant dense<0x7F800000> : vector<256xf32>
    %51 = vector.multi_reduction <minimumf>, %50, %cst_29 [0] : vector<256x256xf32> to vector<256xf32>
    %52 = vector.shape_cast %51 : vector<256xf32> to vector<1x256xf32>
    %cst_30 = arith.constant 1.000000e+30 : f32
    %53 = vector.broadcast %cst_30 : f32 to vector<1x256xf32>
    %54 = arith.cmpf oge, %52, %53 : vector<1x256xf32>
    %cst_31 = arith.constant 0.000000e+00 : f32
    %55 = vector.broadcast %cst_31 : f32 to vector<1x256xf32>
    %56 = arith.select %54, %55, %52 : vector<1x256xi1>, vector<1x256xf32>
    %57 = arith.negf %1 : vector<1x256xf32>
    %58 = math.exp %57 : vector<1x256xf32>
    %cst_32 = arith.constant 1.000000e+00 : f32
    %59 = vector.broadcast %cst_32 : f32 to vector<1x256xf32>
    %60 = arith.addf %59, %58 : vector<1x256xf32>
    %61 = arith.divf %59, %60 : vector<1x256xf32>
    %62 = arith.subf %61, %5 : vector<1x256xf32>
    %63 = arith.mulf %62, %62 : vector<1x256xf32>
    %64 = arith.addf %45, %56 : vector<1x256xf32>
    %65 = arith.mulf %63, %64 : vector<1x256xf32>
    %66 = vector.shape_cast %65 : vector<1x256xf32> to vector<1x1x256xf32>
    %cst_33 = arith.constant dense<0.000000e+00> : vector<1xf32>
    %67 = vector.multi_reduction <add>, %66, %cst_33 [1, 2] : vector<1x1x256xf32> to vector<1xf32>
    %68 = vector.shape_cast %67 : vector<1xf32> to vector<1x1x1xf32>
    %69 = vector.extract %68[0, 0, 0] : f32 from vector<1x1x1xf32>
    %70 = vector.broadcast %69 : f32 to vector<1x1xf32>
    %c0_34 = arith.constant 0 : index
    %c0_35 = arith.constant 0 : index
    %c0_36 = arith.constant 0 : index
    %71 = vector.load %arg8[%c0_34, %c0_35, %c0_36] : memref<1x1x1xf32, #tpu.memory_space<vmem>>, vector<1x1x1xf32>
    %72 = vector.shape_cast %71 : vector<1x1x1xf32> to vector<1x1xf32>
    %73 = vector.shape_cast %70 : vector<1x1xf32> to vector<1x1x1xf32>
    tpu.vector_store %arg8[%c0_34, %c0_35, %c0_36], %73 {strides = array<i32>} : memref<1x1x1xf32, #tpu.memory_space<vmem>>, vector<1x1x1xf32>,
    return
  }
  func.func @transform_0(%arg0: i32, %arg1: memref<2xi32, #tpu.memory_space<smem>>) -> (i32, i32, i32, i32) {
    %0 = arith.index_cast %arg0 : i32 to index
    %1 = memref.load %arg1[%0] : memref<2xi32, #tpu.memory_space<smem>>
    %c0_i32 = arith.constant 0 : i32
    %c0_i32_0 = arith.constant 0 : i32
    %c0_i32_1 = arith.constant 0 : i32
    return %arg0, %1, %c0_i32, %c0_i32_0 : i32, i32, i32, i32
  }
  func.func @transform_1(%arg0: i32, %arg1: memref<2xi32, #tpu.memory_space<smem>>) -> (i32, i32, i32, i32) {
    %0 = arith.index_cast %arg0 : i32 to index
    %1 = memref.load %arg1[%0] : memref<2xi32, #tpu.memory_space<smem>>
    %c0_i32 = arith.constant 0 : i32
    %c0_i32_0 = arith.constant 0 : i32
    %c0_i32_1 = arith.constant 0 : i32
    return %arg0, %1, %c0_i32, %c0_i32_0 : i32, i32, i32, i32
  }
  func.func @transform_2(%arg0: i32, %arg1: memref<2xi32, #tpu.memory_space<smem>>) -> (i32, i32, i32) {
    %c0_i32 = arith.constant 0 : i32
    %c0_i32_0 = arith.constant 0 : i32
    %c0_i32_1 = arith.constant 0 : i32
    return %arg0, %c0_i32, %c0_i32_0 : i32, i32, i32
  }
  func.func @transform_3(%arg0: i32, %arg1: memref<2xi32, #tpu.memory_space<smem>>) -> (i32, i32, i32) {
    %c0_i32 = arith.constant 0 : i32
    %c0_i32_0 = arith.constant 0 : i32
    %c0_i32_1 = arith.constant 0 : i32
    return %arg0, %c0_i32, %c0_i32_0 : i32, i32, i32
  }
  func.func @transform_4(%arg0: i32, %arg1: memref<2xi32, #tpu.memory_space<smem>>) -> (i32, i32) {
    %c0_i32 = arith.constant 0 : i32
    %c0_i32_0 = arith.constant 0 : i32
    %c0_i32_1 = arith.constant 0 : i32
    return %c0_i32, %c0_i32_0 : i32, i32
  }
  func.func @transform_5(%arg0: i32, %arg1: memref<2xi32, #tpu.memory_space<smem>>) -> (i32, i32, i32) {
    %c0_i32 = arith.constant 0 : i32
    %c0_i32_0 = arith.constant 0 : i32
    %c0_i32_1 = arith.constant 0 : i32
    return %arg0, %c0_i32, %c0_i32_0 : i32, i32, i32
  }
  func.func @transform_6(%arg0: i32, %arg1: memref<2xi32, #tpu.memory_space<smem>>) -> (i32, i32, i32) {
    %c0_i32 = arith.constant 0 : i32
    %c0_i32_0 = arith.constant 0 : i32
    %c0_i32_1 = arith.constant 0 : i32
    return %arg0, %c0_i32, %c0_i32_0 : i32, i32, i32
  }
}

</mosaic_0001>

<bundles_post_ra>
// kernel: tpu_custom_call.1
= control target key start
LH: loop header
LB: loop body
LE: loop exit
PB: predicated region body
PF: predicated region fallthrough
CT: control target
= control target key end

     0   :  { %s2583_s0 = inlined_call_operand.vmem [shape: s32[2], index: 0, kind: input, shape index: {}]   ;;  %s2584_s1 = inlined_call_operand.vmem [shape: f32[2,4,1,256], index: 1, kind: input, shape index: {}]   ;;  %s2585_s2 = inlined_call_operand.vmem [shape: f32[2,4,256,1], index: 2, kind: input, shape index: {}]   ;;  %s2586_s3 = inlined_call_operand.vmem [shape: f32[2,1,256], index: 3, kind: input, shape index: {}]   ;;  %s2587_s4 = inlined_call_operand.vmem [shape: f32[2,256,1], index: 4, kind: input, shape index: {}]   ;;  %s2588_s5 = inlined_call_operand.vmem [shape: f32[256,256], index: 5, kind: input, shape index: {}]   ;;  %s2589_s6 = inlined_call_operand.vmem [shape: f32[2,1,1], index: 6, kind: output, shape index: {0}]   ;;  %s2590_s7 = inlined_call_operand.vmem [shape: f32[2,1,1], index: 7, kind: output, shape index: {1}]  }
   0x1   :  { %s13_s26 = sshll.u32 %s2583_s0, 4  ;;  %s14_s26 = int_to_ptr.vmem [resolvable:$true] %s13_s26 }
   0x2   :  { %s1575_s27 = scalar_lea.vmem %s14_s26, 16  ;;  %p1580_p1 = scmp.lt.s32.totalorder %s14_s26, %s14_s26 }
   0x3   :  { %p1576_p0 = scmp.ne.s32.totalorder %s14_s26, %s1575_s27  ;;  %p1581_p2 = scmp.lt.s32.totalorder %s1575_s27, %s1575_s27 }
   0x5   :  { %p1582_p3 = por %p1581_p2, %p1580_p1 }
   0x7   :  { %p1583_p4 = pnand %p1582_p3, %p1576_p0 }
   0x9   :  { %1586 = shalt.err (!%p1583_p4)  }
   0xa   :  { %s1597_s28 = smov [#allocation3]  }
   0xb   :  { %16 = dma.vmem_to_smem %s14_s26, 16, %s1597_s28, [#allocation2] }
   0xc   :  { %1591 = dma.done.wait [#allocation2], 16 }
   0xd   :  { %1592 = vsyncadd [#allocation2], 4294967280 }
   0xe   :  { %18 = sfence }
   0xf   :  { %s1643_s29 = smov 0  }
  0x10 LB: > { %s1531_s0 = sadd.s32 4294967295, %s1595_s29   ;;  %p1535_p5 = scmp.ge.s32.totalorder %s1595_s29, 1  ;;  %s1595_s29 = sphi %s1643_s29, %s24_s29  }
  0x11   : > { %p270_p6 = scmp.lt.s32.totalorder %s1595_s29, 3 }
  0x13   : > { %p271_p7 = pnand %p1535_p5, %p270_p6 }
  0x14   : > { %p325_p8 = scmp.lt.s32.totalorder (!%p271_p7), %s1531_s0, 1  ;;  %s334_s30 = sld [smem:[#allocation3 + %s1531_s0]] (!%p271_p7)  ;;  %v1598_v0 = vmov (!%p271_p7), 0   ;;  %v508_v48 = vlaneseq (!%p271_p7) }
  0x15   : > { %274 = sbr.rel (%p271_p7) target bundleno = 567 (0x237), region = 40  ;;  %1564 = vset.pattern.permute.xlu1 (!%p271_p7), %v1598_v0  ;;  %1563 = vset.pattern.permute.xlu0 (!%p271_p7), %v1598_v0  ;;  %s324_s8 = sld [smem:[#allocation3 + %s1531_s0]] (!%p271_p7) }
  0x1a   : > { %p337_p9 = scmp.lt.s32.totalorder (!%p271_p7), %s334_s30, 3 }
  0x1b   : > { %p327_p10 = scmp.lt.s32.totalorder (!%p271_p7), %s324_s8, 3 }
  0x1c   : > { %s2628_s0 = smov (!%p325_p8, %s1531_s0), 1  ;;  %s2630_s30 = smov (!%p337_p9, %s334_s30), 3 }
  0x1d   : > { %s1547_s9 = sshll.u32 %s2628_s0, 8  ;;  %s1539_s13 = sshll.u32 %s2628_s0, 7 }
  0x1e   : > { %s1659_s12 = scalar_lea.vmem %s2587_s4, %s1547_s9  ;;  %s1538_s14 = sshll.u32 %s2630_s30, 5 }
  0x1f   : > { %v394_v1 = vld [vmem:[%s1659_s12] sm:$0xff]  ;;  %v395_v2 = vld [vmem:[%s1659_s12 + $0x8] sm:$0xff]  ;;  %s341_s15 = sadd.s32 %s1539_s13, %s1538_s14  ;;  %v404_v5 = vld [vmem:[%s1659_s12 + $0x50] sm:$0xff]  ;;  %s2632_s8 = smov (!%p327_p10, %s324_s8), 3 }
  0x20   : > { %vm568_vm0 = vcmp.gt.f32.partialorder %v394_v1, 0.5  ;;  %vm569_vm1 = vcmp.gt.f32.partialorder %v395_v2, 0.5  ;;  %s1540_s16 = sshll.u32 %s341_s15, 3  ;;  %v401_v6 = vld [vmem:[%s1659_s12 + $0x38] sm:$0xff]  ;;  %vm578_vm2 = vcmp.gt.f32.partialorder %v404_v5, 0.5  ;;  %v396_v7 = vld [vmem:[%s1659_s12 + $0x10] sm:$0xff]  ;;  %s356_s10 = scalar_lea.vmem %s2589_s6, %s2628_s0 }
  0x21   : > { %v977_v3 = vsel %vm568_vm0, 1, %v1598_v0  ;;  %v978_v4 = vsel %vm569_vm1, 1, %v1598_v0  ;;  %s1671_s19 = scalar_lea.vmem %s2585_s2, %s1540_s16  ;;  %v397_v8 = vld [vmem:[%s1659_s12 + $0x18] sm:$0xff]  ;;  %v1676_v9 = vsel %vm578_vm2, 1, %v1598_v0  ;;  %vm575_vm6 = vcmp.gt.f32.partialorder %v401_v6, 0.5  ;;  %s1537_s20 = sshll.u32 %s2628_s0, 3 }
  0x22   : > { %1010 = vperm.xlu1 %1564, %v977_v3   ;;  %v362_v10 = vld [vmem:[%s1671_s19 + $0x8] sm:$0xff]  ;;  %v361_v11 = vld [vmem:[%s1671_s19] sm:$0xff]  ;;  %v363_v12 = vld [vmem:[%s1671_s19 + $0x10] sm:$0xff]  ;;  %vm570_vm8 = vcmp.gt.f32.partialorder %v396_v7, 0.5  ;;  %vm571_vm9 = vcmp.gt.f32.partialorder %v397_v8, 0.5  ;;  %s1536_s21 = sshll.u32 %s2632_s8, 1 }
  0x23   : > { %vm536_vm3 = vcmp.gt.f32.partialorder %v362_v10, 0.0  ;;  %vm535_vm4 = vcmp.gt.f32.partialorder %v361_v11, 0.0  ;;  %vm537_vm5 = vcmp.gt.f32.partialorder %v363_v12, 0.0  ;;  %v368_v13 = vld [vmem:[%s1671_s19 + $0x38] sm:$0xff]  ;;  %v398_v17 = vld [vmem:[%s1659_s12 + $0x20] sm:$0xff]  ;;  %v399_v19 = vld [vmem:[%s1659_s12 + $0x28] sm:$0xff]  ;;  %s331_s22 = sadd.s32 %s1537_s20, %s1536_s21  ;;  %s359_s20 = scalar_lea.vmem %s2590_s7, %s2628_s0 }
  0x24   : > { %v601_v14 = vsel %vm536_vm3, 1, %v1598_v0  ;;  %v600_v15 = vsel %vm535_vm4, 1, %v1598_v0  ;;  %vm542_vm7 = vcmp.gt.f32.partialorder %v368_v13, 0.0  ;;  %v364_v16 = vld [vmem:[%s1671_s19 + $0x18] sm:$0xff]  ;;  %v365_v18 = vld [vmem:[%s1671_s19 + $0x20] sm:$0xff]  ;;  %v602_v21 = vsel %vm537_vm5, 1, %v1598_v0  ;;  %s1702_s25 = scalar_lea.vmem %s2584_s1, %s331_s22 }
  0x25   : > { %633 = vperm.xlu0 %1563, %v600_v15   ;;  %v406_v20 = vld [vmem:[%s1659_s12 + $0x60] sm:$0xff]  ;;  %v607_v22 = vsel %vm542_vm7, 1, %v1598_v0  ;;  %v403_v23 = vld [vmem:[%s1659_s12 + $0x48] sm:$0xff]  ;;  %vm538_vm10 = vcmp.gt.f32.partialorder %v364_v16, 0.0  ;;  %v984_v24 = vsel %vm575_vm6, 1, %v1598_v0  ;;  %v979_v25 = vsel %vm570_vm8, 1, %v1598_v0 }
  0x26   : > { %1013 = vperm.xlu1 %1564, %v978_v4   ;;  %v366_v26 = vld [vmem:[%s1671_s19 + $0x28] sm:$0xff]  ;;  %vm572_vm11 = vcmp.gt.f32.partialorder %v398_v17, 0.5  ;;  %v1707_v28 = vsel %vm571_vm9, 1, %v1598_v0  ;;  %vm539_vm12 = vcmp.gt.f32.partialorder %v365_v18, 0.0  ;;  %vm573_vm13 = vcmp.gt.f32.partialorder %v399_v19, 0.5  ;;  %v375_v31 = vld [vmem:[%s1671_s19 + $0x70] sm:$0xff] }
  0x27   : > { %v370_v27 = vld [vmem:[%s1671_s19 + $0x48] sm:$0xff]  ;;  %v1710_v29 = vld [vmem:[%s1702_s25] sm:$0x3]  ;;  %vm580_vm14 = vcmp.gt.f32.partialorder %v406_v20, 0.5  ;;  %vm577_vm1 = vcmp.gt.f32.partialorder %v403_v23, 0.5  ;;  %v603_v32 = vsel %vm538_vm10, 1, %v1598_v0 }
  0x28   : > { %v493_v30 = vand.u32 2147483647, %v1710_v29  ;;  %vm534_vm15 = vcmp.gt.f32.partialorder %v1710_v29, 0.0  ;;  %vm544_vm0 = vcmp.gt.f32.partialorder %v370_v27, 0.0  ;;  %vm540_vm2 = vcmp.gt.f32.partialorder %v366_v26, 0.0  ;;  %v408_v35 = vld [vmem:[%s1659_s12 + $0x70] sm:$0xff] }
  0x29   : > { %654 = vperm.xlu0 %1563, %v607_v22   ;;  %v1719_v33 = vsel %vm572_vm11, 1, %v1598_v0  ;;  %v1722_v34 = vsel %vm534_vm15, 1, %v1598_v0  ;;  %v1727_v36 = vsel %vm539_vm12, 1, %v1598_v0  ;;  %v1731_v37 = vsel %vm573_vm13, 1, %v1598_v0  ;;  %v372_v39 = vld [vmem:[%s1671_s19 + $0x58] sm:$0xff]  ;;  %v377_v41 = vld [vmem:[%s1671_s19 + $0x80] sm:$0xff] }
  0x2a   : > { %636 = vperm.xlu1 %1564, %v601_v14   ;;  %v494_v38 = vsub.f32 0.0, %v493_v30  ;;  %v405_v40 = vld [vmem:[%s1659_s12 + $0x58] sm:$0xff]  ;;  %v1737_v42 = vsel %vm544_vm0, 1, %v1598_v0  ;;  %v1741_v43 = vsel %vm580_vm14, 1, %v1598_v0  ;;  %v1744_v44 = vsel %vm577_vm1, 1, %v1598_v0  ;;  %v410_v45 = vld [vmem:[%s1659_s12 + $0x80] sm:$0xff] }
  0x2b   : > { %vm549_vm3 = vcmp.gt.f32.partialorder %v375_v31, 0.0  ;;  %v1749_v46 = vsel %vm540_vm2, 1, %v1598_v0  ;;  %v374_v50 = vld [vmem:[%s1671_s19 + $0x68] sm:$0xff]  ;;  %s1541_s26 = sshll.u32 %s2628_s0, 1  ;;  %vm546_vm4 = vcmp.gt.f32.partialorder %v372_v39, 0.0  ;;  %vm582_vm5 = vcmp.gt.f32.partialorder %v408_v35, 0.5 }
  0x2c   : > { %v495_v47 = vmul.f32 1.442695, %v494_v38  ;;  %v1752_v49 = vsel %vm549_vm3, 1, %v1598_v0  ;;  %v407_v51 = vld [vmem:[%s1659_s12 + $0x68] sm:$0xff]  ;;  %vm579_vm6 = vcmp.gt.f32.partialorder %v405_v40, 0.5  ;;  %vm551_vm7 = vcmp.gt.f32.partialorder %v377_v41, 0.0  ;;  %s1824_s30 = scalar_lea.vmem %s2586_s3, %s1541_s26 }
  0x2d   : > { %1031 = vperm.xlu0 %1563, %v984_v24   ;;  %v379_v52 = vld [vmem:[%s1671_s19 + $0x90] sm:$0xff]  ;;  %v1759_v53 = vsel %vm546_vm4, 1, %v1598_v0  ;;  %v1762_v54 = vsel %vm582_vm5, 1, %v1598_v0  ;;  %v1765_v55 = vsel %vm579_vm6, 1, %v1598_v0  ;;  %v376_v56 = vld [vmem:[%s1671_s19 + $0x78] sm:$0xff]  ;;  %v1771_v59 = vsel %vm551_vm7, 1, %v1598_v0 }
  0x2e   : > { %639 = vperm.xlu1 %1564, %v602_v21   ;;  %1565 = vpow2.f32 %v495_v47  ;;  %v412_v57 = vld [vmem:[%s1659_s12 + $0x90] sm:$0xff]  ;;  %v409_v58 = vld [vmem:[%s1659_s12 + $0x78] sm:$0xff]  ;;  %vm548_vm8 = vcmp.gt.f32.partialorder %v374_v50, 0.0  ;;  %vm584_vm9 = vcmp.gt.f32.partialorder %v410_v45, 0.5  ;;  %vm581_vm10 = vcmp.gt.f32.partialorder %v407_v51, 0.5  ;;  %v381_v60 = vld [vmem:[%s1671_s19 + $0xa0] sm:$0xff] }
  0x2f   : > { %v378_v61 = vld [vmem:[%s1671_s19 + $0x88] sm:$0xff]  ;;  %v1776_v62 = vsel %vm548_vm8, 1, %v1598_v0  ;;  %v1779_v63 = vsel %vm584_vm9, 1, %v1598_v0  ;;  %v1782_v1 = vsel %vm581_vm10, 1, %v1598_v0  ;;  %vm553_vm11 = vcmp.gt.f32.partialorder %v379_v52, 0.0  ;;  %v414_v2 = vld [vmem:[%s1659_s12 + $0xa0] sm:$0xff] }
  0x30   : > { %v411_v3 = vld [vmem:[%s1659_s12 + $0x88] sm:$0xff]  ;;  %v1787_v4 = vsel %vm553_vm11, 1, %v1598_v0  ;;  %vm550_vm12 = vcmp.gt.f32.partialorder %v376_v56, 0.0  ;;  %vm586_vm13 = vcmp.gt.f32.partialorder %v412_v57, 0.5  ;;  %vm583_vm14 = vcmp.gt.f32.partialorder %v409_v58, 0.5  ;;  %v383_v5 = vld [vmem:[%s1671_s19 + $0xb0] sm:$0xff] }
  0x31   : > { %v380_v6 = vld [vmem:[%s1671_s19 + $0x98] sm:$0xff]  ;;  %v1792_v7 = vsel %vm550_vm12, 1, %v1598_v0  ;;  %v1795_v8 = vsel %vm586_vm13, 1, %v1598_v0  ;;  %v1798_v10 = vsel %vm583_vm14, 1, %v1598_v0  ;;  %vm555_vm15 = vcmp.gt.f32.partialorder %v381_v60, 0.0  ;;  %v416_v11 = vld [vmem:[%s1659_s12 + $0xb0] sm:$0xff] }
  0x32   : > { %642 = vperm.xlu1 %1564, %v603_v32   ;;  %v413_v12 = vld [vmem:[%s1659_s12 + $0x98] sm:$0xff]  ;;  %v1803_v13 = vsel %vm555_vm15, 1, %v1598_v0  ;;  %vm552_vm0 = vcmp.gt.f32.partialorder %v378_v61, 0.0  ;;  %vm588_vm1 = vcmp.gt.f32.partialorder %v414_v2, 0.5  ;;  %vm585_vm2 = vcmp.gt.f32.partialorder %v411_v3, 0.5  ;;  %v385_v14 = vld [vmem:[%s1671_s19 + $0xc0] sm:$0xff] }
  0x33   : > { %v382_v15 = vld [vmem:[%s1671_s19 + $0xa8] sm:$0xff]  ;;  %v1809_v16 = vsel %vm552_vm0, 1, %v1598_v0  ;;  %v1812_v17 = vsel %vm588_vm1, 1, %v1598_v0  ;;  %v1815_v18 = vsel %vm585_vm2, 1, %v1598_v0  ;;  %vm557_vm3 = vcmp.gt.f32.partialorder %v383_v5, 0.0  ;;  %v418_v19 = vld [vmem:[%s1659_s12 + $0xc0] sm:$0xff] }
  0x34   : > { %v415_v20 = vld [vmem:[%s1659_s12 + $0xa8] sm:$0xff]  ;;  %v1827_v21 = vsel %vm557_vm3, 1, %v1598_v0  ;;  %vm554_vm4 = vcmp.gt.f32.partialorder %v380_v6, 0.0  ;;  %vm590_vm5 = vcmp.gt.f32.partialorder %v416_v11, 0.5  ;;  %vm587_vm6 = vcmp.gt.f32.partialorder %v413_v12, 0.5  ;;  %v387_v22 = vld [vmem:[%s1671_s19 + $0xd0] sm:$0xff] }
  0x35   : > { %v1831_v23 = vsel %vm554_vm4, 1, %v1598_v0  ;;  %v1834_v24 = vsel %vm590_vm5, 1, %v1598_v0  ;;  %vm559_vm7 = vcmp.gt.f32.partialorder %v385_v14, 0.0  ;;  %v384_v26 = vld [vmem:[%s1671_s19 + $0xb8] sm:$0xff]  ;;  %v420_v27 = vld [vmem:[%s1659_s12 + $0xd0] sm:$0xff]  ;;  %vm556_vm8 = vcmp.gt.f32.partialorder %v382_v15, 0.0 }
  0x36   : > { %1016 = vperm.xlu1 %1564, %v979_v25   ;;  %v1837_v25 = vsel %vm587_vm6, 1, %v1598_v0  ;;  %vm592_vm9 = vcmp.gt.f32.partialorder %v418_v19, 0.5  ;;  %vm589_vm10 = vcmp.gt.f32.partialorder %v415_v20, 0.5  ;;  %v417_v30 = vld [vmem:[%s1659_s12 + $0xb8] sm:$0xff]  ;;  %v389_v31 = vld [vmem:[%s1671_s19 + $0xe0] sm:$0xff]  ;;  %v1853_v38 = vsel %vm556_vm8, 1, %v1598_v0 }
  0x37   : > { %v1850_v35 = vld [vmem:[%s1824_s30] sm:$0x3]  ;;  %v1856_v39 = vsel %vm592_vm9, 1, %v1598_v0  ;;  %v1859_v40 = vsel %vm589_vm10, 1, %v1598_v0  ;;  %vm561_vm11 = vcmp.gt.f32.partialorder %v387_v22, 0.0  ;;  %v490_v41 = vmax.f32 %v1710_v29, 0.0 }
  0x38   : > { %v1846_v32 = vpop.eup %1565  ;;  %v1865_v47 = vsel %vm561_vm11, 1, %v1598_v0  ;;  %v386_v50 = vld [vmem:[%s1671_s19 + $0xc8] sm:$0xff]  ;;  %vm558_vm12 = vcmp.gt.f32.partialorder %v384_v26, 0.0  ;;  %vm594_vm13 = vcmp.gt.f32.partialorder %v420_v27, 0.5  ;;  %vm591_vm14 = vcmp.gt.f32.partialorder %v417_v30, 0.5  ;;  %v422_v51 = vld [vmem:[%s1659_s12 + $0xe0] sm:$0xff] }
  0x39   : > { %v497_v45 = vadd.f32 1.0, %v1846_v32  ;;  %vm563_vm15 = vcmp.gt.f32.partialorder %v389_v31, 0.0  ;;  %v419_v52 = vld [vmem:[%s1659_s12 + $0xc8] sm:$0xff]  ;;  %v503_v57 = vand.u32 2147483647, %v1846_v32  ;;  %v1872_v58 = vsel %vm558_vm12, 1, %v1598_v0 }
  0x3a   : > { %1019 = vperm.xlu1 %1564, %v1707_v28   ;;  %v1842_v28 = vsel %vm559_vm7, 1, %v1598_v0  ;;  %v391_v60 = vld [vmem:[%s1671_s19 + $0xf0] sm:$0xff]  ;;  %v388_v61 = vld [vmem:[%s1671_s19 + $0xd8] sm:$0xff]  ;;  %v1878_v2 = vsel %vm594_vm13, 1, %v1598_v0  ;;  %v1881_v3 = vsel %vm591_vm14, 1, %v1598_v0  ;;  %v1884_v5 = vsel %vm563_vm15, 1, %v1598_v0 }
  0x3b   : > { %1567 = vlog2.f32 %v497_v45  ;;  %vm560_vm0 = vcmp.gt.f32.partialorder %v386_v50, 0.0  ;;  %v424_v6 = vld [vmem:[%s1659_s12 + $0xf0] sm:$0xff]  ;;  %v491_v11 = vmul.f32 %v1850_v35, %v1710_v29  ;;  %vm596_vm1 = vcmp.gt.f32.partialorder %v422_v51, 0.5  ;;  %v390_v14 = vld [vmem:[%s1671_s19 + $0xe8] sm:$0xff]  ;;  %v392_v27 = vld [vmem:[%s1671_s19 + $0xf8] sm:$0xff] }
  0x3c   : > { %v1890_v12 = vsel %vm560_vm0, 1, %v1598_v0  ;;  %vm593_vm2 = vcmp.gt.f32.partialorder %v419_v52, 0.5  ;;  %v423_v15 = vld [vmem:[%s1659_s12 + $0xe8] sm:$0xff]  ;;  %v1896_v19 = vsel %vm596_vm1, 1, %v1598_v0  ;;  %vm565_vm3 = vcmp.gt.f32.partialorder %v391_v60, 0.0  ;;  %v367_v22 = vld [vmem:[%s1671_s19 + $0x30] sm:$0xff] }
  0x3d   : > { %v1899_v20 = vsel %vm593_vm2, 1, %v1598_v0  ;;  %vm562_vm4 = vcmp.gt.f32.partialorder %v388_v61, 0.0  ;;  %v1903_v29 = vsel %vm565_vm3, 1, %v1598_v0  ;;  %vm598_vm5 = vcmp.gt.f32.partialorder %v424_v6, 0.5  ;;  %v425_v45 = vld [vmem:[%s1659_s12 + $0xf8] sm:$0xff]  ;;  %v400_v60 = vld [vmem:[%s1659_s12 + $0x30] sm:$0xff] }
  0x3e   : > { %645 = vperm.xlu1 %1564, %v1727_v36   ;;  %v500_v36 = vmul.f32 -0.5, %v1846_v32  ;;  %v1906_v26 = vsel %vm562_vm4, 1, %v1598_v0  ;;  %v1911_v30 = vsel %vm598_vm5, 1, %v1598_v0  ;;  %vm564_vm7 = vcmp.gt.f32.partialorder %v390_v14, 0.0 }
  0x3f   : > { %vm597_vm8 = vcmp.gt.f32.partialorder %v423_v15, 0.5  ;;  %vm566_vm9 = vcmp.gt.f32.partialorder %v392_v27, 0.0  ;;  %vm599_vm10 = vcmp.gt.f32.partialorder %v425_v45, 0.5  ;;  %vm541_vm11 = vcmp.gt.f32.partialorder %v367_v22, 0.0 }
  0x40   : > { %v501_v56 = vadd.f32 1.0, %v500_v36  ;;  %v1918_v36 = vsel %vm564_vm7, 1, %v1598_v0  ;;  %v1921_v50 = vsel %vm597_vm8, 1, %v1598_v0  ;;  %v1927_v51 = vsel %vm599_vm10, 1, %v1598_v0 }
  0x41   : > { %v1930_v52 = vshrl.u32 %v508_v48, 7  ;;  %v492_v14 = vsub.f32 %v490_v41, %v491_v11  ;;  %vm504_vm12 = vcmp.lt.f32.partialorder %v503_v57, 0.0004427343  ;;  %vm574_vm13 = vcmp.gt.f32.partialorder %v400_v60, 0.5  ;;  %v369_v48 = vld [vmem:[%s1671_s19 + $0x40] sm:$0xff] }
  0x42   : > { %648 = vperm.xlu1 %1564, %v1749_v46   ;;  %v421_v46 = vld [vmem:[%s1659_s12 + $0xd8] sm:$0xff]  ;;  %v502_v61 = vmul.f32 %v1846_v32, %v501_v56  ;;  %v983_v32 = vsel %vm574_vm13, 1, %v1598_v0  ;;  %vm2591_vm14 = vcmask 1040384   ;;  %vm543_vm15 = vcmp.gt.f32.partialorder %v369_v48, 0.0  ;;  %v402_v57 = vld [vmem:[%s1659_s12 + $0x40] sm:$0xff] }
  0x43   : > { %vm595_vm6 = vcmp.gt.f32.partialorder %v421_v46, 0.5  ;;  %v606_v46 = vsel %vm541_vm11, 1, %v1598_v0  ;;  %v1937_v22 = vsub.s32 0, %v1930_v52  ;;  %v1940_v27 = vsub.s32 1, %v1930_v52  ;;  %v373_v48 = vld [vmem:[%s1671_s19 + $0x60] sm:$0xff] }
  0x44   : > { %v1914_v31 = vsel %vm595_vm6, 1, %v1598_v0  ;;  %vm576_vm0 = vcmp.gt.f32.partialorder %v402_v57, 0.5  ;;  %vm547_vm2 = vcmp.gt.f32.partialorder %v373_v48, 0.0  ;;  %vm567_vm3 = vcmp.gt.f32.partialorder %v1850_v35, 0.5  ;;  %v428_v35 = vld [vmem:[%s2588_s5 + $0x10] sm:$0xff] }
  0x45   : > { %v1568_v6 = vpop.eup %1567 }
  0x46   : > { %1022 = vperm.xlu1 %1564, %v1719_v33   ;;  %v1924_v33 = vsel %vm566_vm9, 1, %v1598_v0  ;;  %v499_v15 = vmul.f32 0.6931472, %v1568_v6  ;;  %v608_v6 = vsel %vm543_vm15, 1, %v1598_v0 }
  0x4a   : > { %1025 = vperm.xlu1 %1564, %v1731_v37   ;;  %v505_v37 = vsel %vm504_vm12, %v502_v61, %v499_v15  ;;  %v371_v61 = vld [vmem:[%s1671_s19 + $0x50] sm:$0xff] }
  0x4b   : > { %v506_v45 = vadd.f32 %v505_v37, %v492_v14  ;;  %v985_v14 = vsel %vm576_vm0, 1, %v1598_v0  ;;  %vm545_vm1 = vcmp.gt.f32.partialorder %v371_v61, 0.0  ;;  %v612_v37 = vsel %vm547_vm2, 1, %v1598_v0 }
  0x4c   : > { %v610_v15 = vsel %vm545_vm1, 1, %v1598_v0 }
  0x4d   : > { %v511_v41 = vrot.slane %v506_v45, %v1937_v22  ;;  %v515_v56 = vrot.slane %v506_v45, %v1940_v27 }
  0x4e   : > { %651 = vperm.xlu1 %1564, %v606_v46  }
  0x4f   : > { %v519_v11 = vsel %vm2591_vm14, %v511_v41, 0.0  ;;  %v520_v60 = vsel %vm2591_vm14, %v515_v56, 0.0 }
  0x50   : > { %v521_v46 = vadd.f32 %v520_v60, %v519_v11 }
  0x52   : > { %1028 = vperm.xlu1 %1564, %v983_v32   ;;  %522 = vadd.xlane.f32.xlu0 %v521_v46  ;;  %v433_v32 = vld [vmem:[%s2588_s5 + $0x38] sm:$0xff] }
  0x56   : > { %657 = vperm.xlu1 %1564, %v608_v6  }
  0x5a   : > { %1034 = vperm.xlu1 %1564, %v985_v14  }
  0x5e   : > { %663 = vperm.xlu1 %1564, %v610_v15  }
  0x62   : > { %1040 = vperm.xlu1 %1564, %v1676_v9   ;;  %v1137_v9 = vsel %vm567_vm3, 1, %v1598_v0 }
  0x66   : > { %669 = vperm.xlu1 %1564, %v612_v37  }
  0x68   : > { %660 = vperm.xlu0 %1563, %v1737_v42   ;;  %v1141_v42 = vrot.slane %v1137_v9, %v1937_v22 }
  0x6a   : > { %1046 = vperm.xlu1 %1564, %v1741_v43   ;;  %v1145_v43 = vrot.slane %v1137_v9, %v1940_v27  ;;  %vm1987_vm4 = vcmp.eq.s32.totalorder %v1141_v42, 1 }
  0x6c   : > { %1037 = vperm.xlu0 %1563, %v1744_v44   ;;  %vm1992_vm5 = vcmp.eq.s32.totalorder %v1145_v43, 1 }
  0x6e   : > { %675 = vperm.xlu1 %1564, %v1752_v49  }
  0x70   : > { %666 = vperm.xlu0 %1563, %v1759_v53  }
  0x72   : > { %1052 = vperm.xlu1 %1564, %v1762_v54   ;;  %v434_v54 = vld [vmem:[%s2588_s5 + $0x40] sm:$0xff] }
  0x74   : > { %1043 = vperm.xlu0 %1563, %v1765_v55  }
  0x76   : > { %681 = vperm.xlu1 %1564, %v1771_v59   ;;  %v764_v59 = vrot.slane %v1722_v34, %v1937_v22 }
  0x78   : > { %672 = vperm.xlu0 %1563, %v1776_v62   ;;  %v768_v62 = vrot.slane %v1722_v34, %v1940_v27  ;;  %vm2028_vm12 = vcmp.eq.s32.totalorder %v764_v59, 1 }
  0x7a   : > { %1058 = vperm.xlu1 %1564, %v1779_v63   ;;  %vm2033_vm0 = vcmp.eq.s32.totalorder %v768_v62, 1  ;;  %v435_v62 = vld [vmem:[%s2588_s5 + $0x48] sm:$0xff] }
  0x7c   : > { %1049 = vperm.xlu0 %1563, %v1782_v1   ;;  %v2602_v1 = vmov 0 }
  0x7e   : > { %687 = vperm.xlu1 %1564, %v1787_v4  }
  0x80   : > { %678 = vperm.xlu0 %1563, %v1792_v7  }
  0x82   : > { %1064 = vperm.xlu1 %1564, %v1795_v8  }
  0x84   : > { %1055 = vperm.xlu0 %1563, %v1798_v10  }
  0x86   : > { %693 = vperm.xlu1 %1564, %v1803_v13   ;;  %v437_v13 = vld [vmem:[%s2588_s5 + $0x58] sm:$0xff] }
  0x88   : > { %684 = vperm.xlu0 %1563, %v1809_v16   ;;  %v426_v16 = vld [vmem:[%s2588_s5] sm:$0xff] }
  0x8a   : > { %1070 = vperm.xlu1 %1564, %v1812_v17  }
  0x8c   : > { %1061 = vperm.xlu0 %1563, %v1815_v18   ;;  %v430_v18 = vld [vmem:[%s2588_s5 + $0x20] sm:$0xff] }
  0x8e   : > { %699 = vperm.xlu1 %1564, %v1827_v21  }
  0x90   : > { %690 = vperm.xlu0 %1563, %v1831_v23  }
  0x92   : > { %1076 = vperm.xlu1 %1564, %v1834_v24   ;;  %v427_v24 = vld [vmem:[%s2588_s5 + $0x8] sm:$0xff] }
  0x94   : > { %1067 = vperm.xlu0 %1563, %v1837_v25  }
  0x96   : > { %705 = vperm.xlu1 %1564, %v1842_v28   ;;  %v431_v28 = vld [vmem:[%s2588_s5 + $0x28] sm:$0xff] }
  0x98   : > { %696 = vperm.xlu0 %1563, %v1853_v38   ;;  %v429_v38 = vld [vmem:[%s2588_s5 + $0x18] sm:$0xff] }
  0x9a   : > { %1082 = vperm.xlu1 %1564, %v1856_v39  }
  0x9c   : > { %1073 = vperm.xlu0 %1563, %v1859_v40  }
  0x9e   : > { %711 = vperm.xlu1 %1564, %v1865_v47  }
  0xa0   : > { %702 = vperm.xlu0 %1563, %v1872_v58  }
  0xa1   : > { %v1011_v0 = vpop.permute.xlu1 %1010 }
  0xa2   : > { %vm1105_vm6 = vcmp.eq.s32.totalorder %v1011_v0, 1  ;;  %1088 = vperm.xlu1 %1564, %v1878_v2  }
  0xa3   : > { %vm1999_vm7 = vmxor %vm1105_vm6, %vm1987_vm4 }
  0xa4   : > { %vm2006_vm8 = vmxor %vm1105_vm6, %vm1992_vm5  ;;  %1079 = vperm.xlu0 %1563, %v1881_v3   ;;  %v634_v7 = vpop.permute.xlu0 %633 }
  0xa5   : > { %v1014_v55 = vpop.permute.xlu1 %1013  ;;  %vm728_vm15 = vcmp.eq.s32.totalorder %v634_v7, 1  ;;  %v1213_v14 = vsel %vm2006_vm8, %v427_v24, 1e+30 }
  0xa6   : > { %vm1106_vm9 = vcmp.eq.s32.totalorder %v1014_v55, 1  ;;  %717 = vperm.xlu1 %1564, %v1884_v5   ;;  %vm2055_vm3 = vmxor %vm728_vm15, %vm2028_vm12  ;;  %v432_v5 = vld [vmem:[%s2588_s5 + $0x30] sm:$0xff] }
  0xa7   : > { %vm2017_vm10 = vmxor %vm1106_vm9, %vm1987_vm4  ;;  %v835_v39 = vsel %vm2055_vm3, %v426_v16, 1e+30 }
  0xa8   : > { %vm2024_vm11 = vmxor %vm1106_vm9, %vm1992_vm5  ;;  %708 = vperm.xlu0 %1563, %v1890_v12   ;;  %v655_v23 = vpop.permute.xlu0 %654  ;;  %v1214_v42 = vsel %vm2017_vm10, %v428_v35, 1e+30 }
  0xa9   : > { %v2603_v1 = vsel %vm2024_vm11, 4294967295, %v2602_v1  ;;  %v637_v4 = vpop.permute.xlu1 %636  ;;  %vm2067_vm6 = vmxor %vm728_vm15, %vm2033_vm0 }
  0xaa   : > { %vm729_vm13 = vcmp.eq.s32.totalorder %v637_v4, 1  ;;  %1094 = vperm.xlu1 %1564, %v1896_v19   ;;  %v836_v47 = vsel %vm2067_vm6, %v427_v24, 1e+30  ;;  %v436_v4 = vld [vmem:[%s2588_s5 + $0x50] sm:$0xff] }
  0xab   : > { %vm2039_vm1 = vmxor %vm729_vm13, %vm2028_vm12 }
  0xac   : > { %vm2046_vm2 = vmxor %vm729_vm13, %vm2033_vm0  ;;  %vm735_vm13 = vcmp.eq.s32.totalorder %v655_v23, 1  ;;  %1085 = vperm.xlu0 %1563, %v1899_v20   ;;  %v1032_v19 = vpop.permute.xlu0 %1031  ;;  %v837_v20 = vsel %vm2039_vm1, %v428_v35, 1e+30 }
  0xad   : > { %v640_v21 = vpop.permute.xlu1 %639  ;;  %vm2093_vm11 = vmxor %vm735_vm13, %vm2028_vm12  ;;  %vm1112_vm6 = vcmp.eq.s32.totalorder %v1032_v19, 1  ;;  %v838_v41 = vsel %vm2046_vm2, %v429_v38, 1e+30 }
  0xae   : > { %vm730_vm9 = vcmp.eq.s32.totalorder %v640_v21, 1  ;;  %723 = vperm.xlu1 %1564, %v1903_v29   ;;  %vm2128_vm2 = vmxor %vm1112_vm6, %vm1992_vm5 }
  0xaf   : > { %vm775_vm14 = vmxor %vm730_vm9, %vm2028_vm12 }
  0xb0   : > { %vm776_vm15 = vmxor %vm730_vm9, %vm2033_vm0  ;;  %v839_v40 = vsel %vm775_vm14, %v430_v18, 1e+30  ;;  %714 = vperm.xlu0 %1563, %v1906_v26   ;;  %v1212_v26 = vsel %vm1999_vm7, %v426_v16, 1e+30  ;;  %v441_v16 = vld [vmem:[%s2588_s5 + $0x78] sm:$0xff] }
  0xb1   : > { %v840_v58 = vsel %vm776_vm15, %v431_v28, 1e+30  ;;  %v899_v2 = vmin.f32 %v835_v39, %v839_v40  ;;  %v643_v12 = vpop.permute.xlu1 %642  ;;  %vm2105_vm14 = vmxor %vm735_vm13, %vm2033_vm0  ;;  %v1227_v45 = vsel %vm2128_vm2, %v441_v16, 1e+30 }
  0xb2   : > { %v936_v29 = vmin.f32 %v836_v47, %v840_v58  ;;  %vm731_vm3 = vcmp.eq.s32.totalorder %v643_v12, 1  ;;  %1100 = vperm.xlu1 %1564, %v1911_v30   ;;  %vm2122_vm13 = vmxor %vm1112_vm6, %vm1987_vm4 }
  0xb3   : > { %vm777_vm1 = vmxor %vm731_vm3, %vm2028_vm12 }
  0xb4   : > { %vm778_vm9 = vmxor %vm731_vm3, %vm2033_vm0  ;;  %v841_v56 = vsel %vm777_vm1, %v432_v5, 1e+30  ;;  %1091 = vperm.xlu0 %1563, %v1914_v31  }
  0xb5   : > { %v842_v57 = vsel %vm778_vm9, %v433_v32, 1e+30  ;;  %v900_v11 = vmin.f32 %v837_v20, %v841_v56  ;;  %v1017_v30 = vpop.permute.xlu1 %1016 }
  0xb6   : > { %v937_v6 = vmin.f32 %v838_v41, %v842_v57  ;;  %vm1107_vm15 = vcmp.eq.s32.totalorder %v1017_v30, 1 }
  0xb7   : > { %vm1152_vm3 = vmxor %vm1107_vm15, %vm1987_vm4 }
  0xb8   : > { %vm1153_vm1 = vmxor %vm1107_vm15, %vm1992_vm5  ;;  %v1216_v61 = vsel %vm1152_vm3, %v430_v18, 1e+30  ;;  %720 = vperm.xlu0 %1563, %v1918_v36   ;;  %vm2624_vm15 = vnez %v2603_v1 }
  0xb9   : > { %v1217_v15 = vsel %vm1153_vm1, %v431_v28, 1e+30  ;;  %v1276_v48 = vmin.f32 %v1212_v26, %v1216_v61  ;;  %v1020_v37 = vpop.permute.xlu1 %1019  ;;  %v1215_v43 = vsel %vm2624_vm15, %v429_v38, 1e+30  ;;  %v850_v28 = vsel %vm2105_vm14, %v441_v16, 1e+30 }
  0xba   : > { %v1313_v9 = vmin.f32 %v1213_v14, %v1217_v15  ;;  %vm1108_vm6 = vcmp.eq.s32.totalorder %v1020_v37, 1  ;;  %v442_v61 = vld [vmem:[%s2588_s5 + $0x80] sm:$0xff] }
  0xbb   : > { %vm1154_vm9 = vmxor %vm1108_vm6, %vm1987_vm4 }
  0xbc   : > { %vm1155_vm7 = vmxor %vm1108_vm6, %vm1992_vm5  ;;  %v1218_v31 = vsel %vm1154_vm9, %v432_v5, 1e+30  ;;  %1097 = vperm.xlu0 %1563, %v1921_v50   ;;  %v440_v50 = vld [vmem:[%s2588_s5 + $0x70] sm:$0xff]  ;;  %v438_v5 = vld [vmem:[%s2588_s5 + $0x60] sm:$0xff] }
  0xbd   : > { %v1219_v0 = vsel %vm1155_vm7, %v433_v32, 1e+30  ;;  %v1277_v53 = vmin.f32 %v1214_v42, %v1218_v31  ;;  %v646_v55 = vpop.permute.xlu1 %645  ;;  %v849_v24 = vsel %vm2093_vm11, %v440_v50, 1e+30  ;;  %v1226_v19 = vsel %vm2122_vm13, %v440_v50, 1e+30 }
  0xbe   : > { %v1314_v59 = vmin.f32 %v1215_v43, %v1219_v0  ;;  %vm732_vm8 = vcmp.eq.s32.totalorder %v646_v55, 1  ;;  %v446_v55 = vld [vmem:[%s2588_s5 + $0xa0] sm:$0xff] }
  0xbf   : > { %vm779_vm10 = vmxor %vm732_vm8, %vm2028_vm12 }
  0xc0   : > { %vm780_vm3 = vmxor %vm732_vm8, %vm2033_vm0  ;;  %v843_v36 = vsel %vm779_vm10, %v434_v54, 1e+30  ;;  %726 = vperm.xlu0 %1563, %v1924_v33  }
  0xc1   : > { %v844_v63 = vsel %vm780_vm3, %v435_v62, 1e+30  ;;  %v901_v1 = vmin.f32 %v899_v2, %v843_v36  ;;  %v649_v7 = vpop.permute.xlu1 %648  ;;  %v447_v36 = vld [vmem:[%s2588_s5 + $0xa8] sm:$0xff] }
  0xc2   : > { %v938_v10 = vmin.f32 %v936_v29, %v844_v63  ;;  %vm733_vm1 = vcmp.eq.s32.totalorder %v649_v7, 1  ;;  %v439_v29 = vld [vmem:[%s2588_s5 + $0x68] sm:$0xff] }
  0xc3   : > { %vm781_vm6 = vmxor %vm733_vm1, %vm2028_vm12 }
  0xc4   : > { %vm782_vm9 = vmxor %vm733_vm1, %vm2033_vm0  ;;  %v845_v17 = vsel %vm781_vm6, %v436_v4, 1e+30  ;;  %1103 = vperm.xlu0 %1563, %v1927_v51  }
  0xc5   : > { %v846_v18 = vsel %vm782_vm9, %v437_v13, 1e+30  ;;  %v902_v21 = vmin.f32 %v900_v11, %v845_v17  ;;  %v1023_v23 = vpop.permute.xlu1 %1022 }
  0xc6   : > { %v939_v25 = vmin.f32 %v937_v6, %v846_v18  ;;  %vm1109_vm7 = vcmp.eq.s32.totalorder %v1023_v23, 1 }
  0xc7   : > { %vm1156_vm15 = vmxor %vm1109_vm7, %vm1987_vm4  ;;  %v2184_v35 = vmin.f32 %v902_v21, %v849_v24  ;;  %v450_v21 = vld [vmem:[%s2588_s5 + $0xc0] sm:$0xff] }
  0xc8   : > { %vm1157_vm8 = vmxor %vm1109_vm7, %vm1992_vm5  ;;  %v1220_v33 = vsel %vm1156_vm15, %v434_v54, 1e+30  ;;  %v2189_v38 = vmin.f32 %v939_v25, %v850_v28  ;;  %v451_v28 = vld [vmem:[%s2588_s5 + $0xc8] sm:$0xff] }
  0xc9   : > { %v1221_v39 = vsel %vm1157_vm8, %v435_v62, 1e+30  ;;  %v1278_v40 = vmin.f32 %v1276_v48, %v1220_v33  ;;  %v1026_v47 = vpop.permute.xlu1 %1025  ;;  %v443_v48 = vld [vmem:[%s2588_s5 + $0x88] sm:$0xff] }
  0xca   : > { %v1315_v58 = vmin.f32 %v1313_v9, %v1221_v39  ;;  %vm1110_vm11 = vcmp.eq.s32.totalorder %v1026_v47, 1 }
  0xcb   : > { %vm1158_vm14 = vmxor %vm1110_vm11, %vm1987_vm4 }
  0xcc   : > { %vm1159_vm10 = vmxor %vm1110_vm11, %vm1992_vm5  ;;  %v1222_v2 = vsel %vm1158_vm14, %v436_v4, 1e+30 }
  0xcd   : > { %v1223_v3 = vsel %vm1159_vm10, %v437_v13, 1e+30  ;;  %v1279_v51 = vmin.f32 %v1277_v53, %v1222_v2  ;;  %v652_v12 = vpop.permute.xlu1 %651 }
  0xce   : > { %v1316_v20 = vmin.f32 %v1314_v59, %v1223_v3  ;;  %vm734_vm3 = vcmp.eq.s32.totalorder %v652_v12, 1  ;;  %v445_v12 = vld [vmem:[%s2588_s5 + $0x98] sm:$0xff] }
  0xcf   : > { %vm783_vm1 = vmxor %vm734_vm3, %vm2028_vm12  ;;  %v2207_v32 = vmin.f32 %v1279_v51, %v1226_v19  ;;  %v444_v51 = vld [vmem:[%s2588_s5 + $0x90] sm:$0xff] }
  0xd0   : > { %vm784_vm6 = vmxor %vm734_vm3, %vm2033_vm0  ;;  %v847_v41 = vsel %vm783_vm1, %v438_v5, 1e+30  ;;  %v2211_v56 = vmin.f32 %v1316_v20, %v1227_v45 }
  0xd1   : > { %v848_v57 = vsel %vm784_vm6, %v439_v29, 1e+30  ;;  %v903_v11 = vmin.f32 %v901_v1, %v847_v41  ;;  %v1029_v60 = vpop.permute.xlu1 %1028  ;;  %v454_v41 = vld [vmem:[%s2588_s5 + $0xe0] sm:$0xff] }
  0xd2   : > { %v940_v30 = vmin.f32 %v938_v10, %v848_v57  ;;  %vm1111_vm13 = vcmp.eq.s32.totalorder %v1029_v60, 1 }
  0xd3   : > { %vm1160_vm9 = vmxor %vm1111_vm13, %vm1987_vm4 }
  0xd4   : > { %vm1161_vm2 = vmxor %vm1111_vm13, %vm1992_vm5  ;;  %v1224_v6 = vsel %vm1160_vm9, %v438_v5, 1e+30 }
  0xd5   : > { %v1225_v46 = vsel %vm1161_vm2, %v439_v29, 1e+30  ;;  %v1280_v26 = vmin.f32 %v1278_v40, %v1224_v6  ;;  %v658_v14 = vpop.permute.xlu1 %657  ;;  %v455_v6 = vld [vmem:[%s2588_s5 + $0xe8] sm:$0xff] }
  0xd6   : > { %v1317_v15 = vmin.f32 %v1315_v58, %v1225_v46  ;;  %vm736_vm7 = vcmp.eq.s32.totalorder %v658_v14, 1 }
  0xd7   : > { %vm787_vm15 = vmxor %vm736_vm7, %vm2028_vm12 }
  0xd8   : > { %vm788_vm8 = vmxor %vm736_vm7, %vm2033_vm0  ;;  %v851_v37 = vsel %vm787_vm15, %v442_v61, 1e+30 }
  0xd9   : > { %v852_v9 = vsel %vm788_vm8, %v443_v48, 1e+30  ;;  %v905_v42 = vmin.f32 %v903_v11, %v851_v37  ;;  %v1035_v31 = vpop.permute.xlu1 %1034 }
  0xda   : > { %v942_v43 = vmin.f32 %v940_v30, %v852_v9  ;;  %vm1113_vm11 = vcmp.eq.s32.totalorder %v1035_v31, 1 }
  0xdb   : > { %vm1164_vm14 = vmxor %vm1113_vm11, %vm1987_vm4 }
  0xdc   : > { %vm1165_vm10 = vmxor %vm1113_vm11, %vm1992_vm5  ;;  %v1228_v0 = vsel %vm1164_vm14, %v442_v61, 1e+30 }
  0xdd   : > { %v1229_v53 = vsel %vm1165_vm10, %v443_v48, 1e+30  ;;  %v1282_v54 = vmin.f32 %v1280_v26, %v1228_v0  ;;  %v664_v59 = vpop.permute.xlu1 %663 }
  0xde   : > { %v1319_v62 = vmin.f32 %v1317_v15, %v1229_v53  ;;  %vm738_vm3 = vcmp.eq.s32.totalorder %v664_v59, 1 }
  0xdf   : > { %vm791_vm1 = vmxor %vm738_vm3, %vm2028_vm12  ;;  %v523_v13 = vpop.xlane.xlu0 %522 }
  0xe0   : > { %vm792_vm6 = vmxor %vm738_vm3, %vm2033_vm0  ;;  %v855_v63 = vsel %vm791_vm1, %v446_v55, 1e+30  ;;  %v524_v50 = vrot.slane %v523_v13, 4 }
  0xe1   : > { %v856_v1 = vsel %vm792_vm6, %v447_v36, 1e+30  ;;  %v907_v4 = vmin.f32 %v905_v42, %v855_v63  ;;  %v1041_v7 = vpop.permute.xlu1 %1040 }
  0xe2   : > { %v944_v10 = vmin.f32 %v942_v43, %v856_v1  ;;  %vm1115_vm13 = vcmp.eq.s32.totalorder %v1041_v7, 1  ;;  %v525_v24 = vadd.f32 %v524_v50, %v523_v13  ;;  %v448_v43 = vld [vmem:[%s2588_s5 + $0xb0] sm:$0xff]  ;;  %v459_v1 = vld [vmem:[%s2588_s5 + $0x108] sm:$0xff] }
  0xe3   : > { %vm1168_vm9 = vmxor %vm1115_vm13, %vm1987_vm4 }
  0xe4   : > { %vm1169_vm2 = vmxor %vm1115_vm13, %vm1992_vm5  ;;  %v1232_v16 = vsel %vm1168_vm9, %v446_v55, 1e+30  ;;  %v526_v33 = vrot.slane %v525_v24, 2 }
  0xe5   : > { %v1233_v17 = vsel %vm1169_vm2, %v447_v36, 1e+30  ;;  %v1284_v18 = vmin.f32 %v1282_v54, %v1232_v16  ;;  %v670_v23 = vpop.permute.xlu1 %669  ;;  %v449_v54 = vld [vmem:[%s2588_s5 + $0xb8] sm:$0xff] }
  0xe6   : > { %v1321_v25 = vmin.f32 %v1319_v62, %v1233_v17  ;;  %vm740_vm7 = vcmp.eq.s32.totalorder %v670_v23, 1  ;;  %v527_v3 = vadd.f32 %v526_v33, %v525_v24  ;;  %v458_v62 = vld [vmem:[%s2588_s5 + $0x100] sm:$0xff] }
  0xe7   : > { %vm795_vm15 = vmxor %vm740_vm7, %vm2028_vm12  ;;  %v661_v5 = vpop.permute.xlu0 %660 }
  0xe8   : > { %vm796_vm8 = vmxor %vm740_vm7, %vm2033_vm0  ;;  %v859_v39 = vsel %vm795_vm15, %v450_v21, 1e+30  ;;  %vm737_vm10 = vcmp.eq.s32.totalorder %v661_v5, 1  ;;  %v528_v20 = vrot.slane %v527_v3, 1 }
  0xe9   : > { %v860_v40 = vsel %vm796_vm8, %v451_v28, 1e+30  ;;  %v909_v47 = vmin.f32 %v907_v4, %v859_v39  ;;  %v1047_v58 = vpop.permute.xlu1 %1046  ;;  %vm789_vm1 = vmxor %vm737_vm10, %vm2028_vm12 }
  0xea   : > { %v946_v2 = vmin.f32 %v944_v10, %v860_v40  ;;  %vm1117_vm11 = vcmp.eq.s32.totalorder %v1047_v58, 1  ;;  %vm790_vm6 = vmxor %vm737_vm10, %vm2033_vm0  ;;  %v853_v11 = vsel %vm789_vm1, %v444_v51, 1e+30  ;;  %v529_v30 = vadd.f32 %v528_v20, %v527_v3  ;;  %v453_v40 = vld [vmem:[%s2588_s5 + $0xd8] sm:$0xff]  ;;  %v462_v3 = vld [vmem:[%s2588_s5 + $0x120] sm:$0xff] }
  0xeb   : > { %vm1172_vm14 = vmxor %vm1117_vm11, %vm1987_vm4  ;;  %v854_v46 = vsel %vm790_vm6, %v445_v12, 1e+30  ;;  %v906_v26 = vmin.f32 %v2184_v35, %v853_v11  ;;  %v1038_v61 = vpop.permute.xlu0 %1037 }
  0xec   : > { %vm1173_vm3 = vmxor %vm1117_vm11, %vm1992_vm5  ;;  %v1236_v19 = vsel %vm1172_vm14, %v450_v21, 1e+30  ;;  %v943_v14 = vmin.f32 %v2189_v38, %v854_v46  ;;  %vm1114_vm2 = vcmp.eq.s32.totalorder %v1038_v61, 1  ;;  %1548 = vpush %v529_v30 }
  0xed   : > { %v1237_v29 = vsel %vm1173_vm3, %v451_v28, 1e+30  ;;  %v1286_v45 = vmin.f32 %v1284_v18, %v1236_v19  ;;  %v676_v57 = vpop.permute.xlu1 %675  ;;  %vm1166_vm15 = vmxor %vm1114_vm2, %vm1987_vm4  ;;  %v452_v28 = vld [vmem:[%s2588_s5 + $0xd0] sm:$0xff]  ;;  %v463_v19 = vld [vmem:[%s2588_s5 + $0x128] sm:$0xff] }
  0xee   : > { %v1323_v60 = vmin.f32 %v1321_v25, %v1237_v29  ;;  %vm742_vm13 = vcmp.eq.s32.totalorder %v676_v57, 1  ;;  %vm1167_vm8 = vmxor %vm1114_vm2, %vm1992_vm5  ;;  %v1230_v35 = vsel %vm1166_vm15, %v444_v51, 1e+30 }
  0xef   : > { %vm799_vm9 = vmxor %vm742_vm13, %vm2028_vm12  ;;  %v1231_v31 = vsel %vm1167_vm8, %v445_v12, 1e+30  ;;  %v1283_v38 = vmin.f32 %v2207_v32, %v1230_v35  ;;  %v667_v0 = vpop.permute.xlu0 %666 }
  0xf0   : > { %vm800_vm7 = vmxor %vm742_vm13, %vm2033_vm0  ;;  %v863_v15 = vsel %vm799_vm9, %v454_v41, 1e+30  ;;  %v1320_v53 = vmin.f32 %v2211_v56, %v1231_v31  ;;  %vm739_vm10 = vcmp.eq.s32.totalorder %v667_v0, 1  ;;  %v466_v31 = vld [vmem:[%s2588_s5 + $0x140] sm:$0xff] }
  0xf1   : > { %v864_v48 = vsel %vm800_vm7, %v455_v6, 1e+30  ;;  %v911_v37 = vmin.f32 %v909_v47, %v863_v15  ;;  %v1053_v9 = vpop.permute.xlu1 %1052  ;;  %vm793_vm1 = vmxor %vm739_vm10, %vm2028_vm12 }
  0xf2   : > { %v948_v42 = vmin.f32 %v946_v2, %v864_v48  ;;  %vm1119_vm11 = vcmp.eq.s32.totalorder %v1053_v9, 1  ;;  %vm794_vm6 = vmxor %vm739_vm10, %vm2033_vm0  ;;  %v857_v56 = vsel %vm793_vm1, %v448_v43, 1e+30 }
  0xf3   : > { %vm1176_vm14 = vmxor %vm1119_vm11, %vm1987_vm4  ;;  %v858_v4 = vsel %vm794_vm6, %v449_v54, 1e+30  ;;  %v908_v7 = vmin.f32 %v906_v26, %v857_v56  ;;  %v1044_v10 = vpop.permute.xlu0 %1043 }
  0xf4   : > { %vm1177_vm3 = vmxor %vm1119_vm11, %vm1992_vm5  ;;  %v1240_v55 = vsel %vm1176_vm14, %v454_v41, 1e+30  ;;  %v945_v13 = vmin.f32 %v943_v14, %v858_v4  ;;  %vm1116_vm2 = vcmp.eq.s32.totalorder %v1044_v10, 1  ;;  %v456_v14 = vld [vmem:[%s2588_s5 + $0xf0] sm:$0xff] }
  0xf5   : > { %v1241_v32 = vsel %vm1177_vm3, %v455_v6, 1e+30  ;;  %v1288_v59 = vmin.f32 %v1286_v45, %v1240_v55  ;;  %v682_v36 = vpop.permute.xlu1 %681  ;;  %vm1170_vm15 = vmxor %vm1116_vm2, %vm1987_vm4 }
  0xf6   : > { %v1325_v63 = vmin.f32 %v1323_v60, %v1241_v32  ;;  %vm744_vm13 = vcmp.eq.s32.totalorder %v682_v36, 1  ;;  %vm1171_vm8 = vmxor %vm1116_vm2, %vm1992_vm5  ;;  %v1234_v21 = vsel %vm1170_vm15, %v448_v43, 1e+30 }
  0xf7   : > { %vm803_vm9 = vmxor %vm744_vm13, %vm2028_vm12  ;;  %v1235_v24 = vsel %vm1171_vm8, %v449_v54, 1e+30  ;;  %v1285_v25 = vmin.f32 %v1283_v38, %v1234_v21  ;;  %v673_v33 = vpop.permute.xlu0 %672 }
  0xf8   : > { %vm804_vm7 = vmxor %vm744_vm13, %vm2033_vm0  ;;  %v867_v50 = vsel %vm803_vm9, %v458_v62, 1e+30  ;;  %v1322_v39 = vmin.f32 %v1320_v53, %v1235_v24  ;;  %vm741_vm10 = vcmp.eq.s32.totalorder %v673_v33, 1  ;;  %v467_v53 = vld [vmem:[%s2588_s5 + $0x148] sm:$0xff]  ;;  %v470_v24 = vld [vmem:[%s2588_s5 + $0x160] sm:$0xff] }
  0xf9   : > { %v868_v16 = vsel %vm804_vm7, %v459_v1, 1e+30  ;;  %v913_v17 = vmin.f32 %v911_v37, %v867_v50  ;;  %v1059_v18 = vpop.permute.xlu1 %1058  ;;  %vm797_vm1 = vmxor %vm741_vm10, %vm2028_vm12  ;;  %v457_v37 = vld [vmem:[%s2588_s5 + $0xf8] sm:$0xff] }
  0xfa   : > { %v950_v23 = vmin.f32 %v948_v42, %v868_v16  ;;  %vm1121_vm11 = vcmp.eq.s32.totalorder %v1059_v18, 1  ;;  %vm798_vm6 = vmxor %vm741_vm10, %vm2033_vm0  ;;  %v861_v5 = vsel %vm797_vm1, %v452_v28, 1e+30 }
  0xfb   : > { %vm1180_vm14 = vmxor %vm1121_vm11, %vm1987_vm4  ;;  %v862_v20 = vsel %vm798_vm6, %v453_v40, 1e+30  ;;  %v910_v29 = vmin.f32 %v908_v7, %v861_v5  ;;  %v1050_v45 = vpop.permute.xlu0 %1049 }
  0xfc   : > { %vm1181_vm3 = vmxor %vm1121_vm11, %vm1992_vm5  ;;  %v1244_v47 = vsel %vm1180_vm14, %v458_v62, 1e+30  ;;  %v947_v41 = vmin.f32 %v945_v13, %v862_v20  ;;  %vm1118_vm2 = vcmp.eq.s32.totalorder %v1050_v45, 1  ;;  %v460_v13 = vld [vmem:[%s2588_s5 + $0x110] sm:$0xff] }
  0xfd   : > { %v1245_v58 = vsel %vm1181_vm3, %v459_v1, 1e+30  ;;  %v1290_v2 = vmin.f32 %v1288_v59, %v1244_v47  ;;  %v688_v51 = vpop.permute.xlu1 %687  ;;  %vm1174_vm15 = vmxor %vm1118_vm2, %vm1987_vm4 }
  0xfe   : > { %v1327_v12 = vmin.f32 %v1325_v63, %v1245_v58  ;;  %vm746_vm13 = vcmp.eq.s32.totalorder %v688_v51, 1  ;;  %vm1175_vm8 = vmxor %vm1118_vm2, %vm1992_vm5  ;;  %v1238_v6 = vsel %vm1174_vm15, %v452_v28, 1e+30 }
  0xff   : > { %vm807_vm9 = vmxor %vm746_vm13, %vm2028_vm12  ;;  %v1239_v26 = vsel %vm1175_vm8, %v453_v40, 1e+30  ;;  %v1287_v61 = vmin.f32 %v1285_v25, %v1238_v6  ;;  %v679_v15 = vpop.permute.xlu0 %678 }
 0x100   : > { %vm808_vm7 = vmxor %vm746_vm13, %vm2033_vm0  ;;  %v871_v57 = vsel %vm807_vm9, %v462_v3, 1e+30  ;;  %v1324_v48 = vmin.f32 %v1322_v39, %v1239_v26  ;;  %vm743_vm10 = vcmp.eq.s32.totalorder %v679_v15, 1  ;;  %v471_v39 = vld [vmem:[%s2588_s5 + $0x168] sm:$0xff]  ;;  %v474_v26 = vld [vmem:[%s2588_s5 + $0x180] sm:$0xff] }
 0x101   : > { %v872_v11 = vsel %vm808_vm7, %v463_v19, 1e+30  ;;  %v915_v60 = vmin.f32 %v913_v17, %v871_v57  ;;  %v1065_v30 = vpop.permute.xlu1 %1064  ;;  %vm801_vm1 = vmxor %vm743_vm10, %vm2028_vm12  ;;  %v461_v17 = vld [vmem:[%s2588_s5 + $0x118] sm:$0xff] }
 0x102   : > { %v952_v46 = vmin.f32 %v950_v23, %v872_v11  ;;  %vm1123_vm11 = vcmp.eq.s32.totalorder %v1065_v30, 1  ;;  %vm802_vm6 = vmxor %vm743_vm10, %vm2033_vm0  ;;  %v865_v43 = vsel %vm801_vm1, %v456_v14, 1e+30 }
 0x103   : > { %vm1184_vm14 = vmxor %vm1123_vm11, %vm1987_vm4  ;;  %v866_v54 = vsel %vm802_vm6, %v457_v37, 1e+30  ;;  %v912_v55 = vmin.f32 %v910_v29, %v865_v43  ;;  %v1056_v32 = vpop.permute.xlu0 %1055 }
 0x104   : > { %vm1185_vm3 = vmxor %vm1123_vm11, %vm1992_vm5  ;;  %v1248_v9 = vsel %vm1184_vm14, %v462_v3, 1e+30  ;;  %v949_v59 = vmin.f32 %v947_v41, %v866_v54  ;;  %vm1120_vm2 = vcmp.eq.s32.totalorder %v1056_v32, 1  ;;  %v464_v41 = vld [vmem:[%s2588_s5 + $0x130] sm:$0xff] }
 0x105   : > { %v1249_v35 = vsel %vm1185_vm3, %v463_v19, 1e+30  ;;  %v1292_v42 = vmin.f32 %v1290_v2, %v1248_v9  ;;  %v694_v38 = vpop.permute.xlu1 %693  ;;  %vm1178_vm15 = vmxor %vm1120_vm2, %vm1987_vm4 }
 0x106   : > { %v1329_v0 = vmin.f32 %v1327_v12, %v1249_v35  ;;  %vm748_vm13 = vcmp.eq.s32.totalorder %v694_v38, 1  ;;  %vm1179_vm8 = vmxor %vm1120_vm2, %vm1992_vm5  ;;  %v1242_v1 = vsel %vm1178_vm15, %v456_v14, 1e+30 }
 0x107   : > { %vm811_vm9 = vmxor %vm748_vm13, %vm2028_vm12  ;;  %v1243_v7 = vsel %vm1179_vm8, %v457_v37, 1e+30  ;;  %v1289_v10 = vmin.f32 %v1287_v61, %v1242_v1  ;;  %v685_v50 = vpop.permute.xlu0 %684 }
 0x108   : > { %vm812_vm7 = vmxor %vm748_vm13, %vm2033_vm0  ;;  %v875_v62 = vsel %vm811_vm9, %v466_v31, 1e+30  ;;  %v1326_v16 = vmin.f32 %v1324_v48, %v1243_v7  ;;  %vm745_vm10 = vcmp.eq.s32.totalorder %v685_v50, 1  ;;  %v475_v48 = vld [vmem:[%s2588_s5 + $0x188] sm:$0xff]  ;;  %v478_v7 = vld [vmem:[%s2588_s5 + $0x1a0] sm:$0xff] }
 0x109   : > { %v876_v36 = vsel %vm812_vm7, %v467_v53, 1e+30  ;;  %v917_v56 = vmin.f32 %v915_v60, %v875_v62  ;;  %v1071_v63 = vpop.permute.xlu1 %1070  ;;  %vm805_vm1 = vmxor %vm745_vm10, %vm2028_vm12  ;;  %v465_v60 = vld [vmem:[%s2588_s5 + $0x138] sm:$0xff] }
 0x10a   : > { %v954_v4 = vmin.f32 %v952_v46, %v876_v36  ;;  %vm1125_vm11 = vcmp.eq.s32.totalorder %v1071_v63, 1  ;;  %vm806_vm6 = vmxor %vm745_vm10, %vm2033_vm0  ;;  %v869_v28 = vsel %vm805_vm1, %v460_v13, 1e+30 }
 0x10b   : > { %vm1188_vm14 = vmxor %vm1125_vm11, %vm1987_vm4  ;;  %v870_v40 = vsel %vm806_vm6, %v461_v17, 1e+30  ;;  %v914_v47 = vmin.f32 %v912_v55, %v869_v28  ;;  %v1062_v58 = vpop.permute.xlu0 %1061 }
 0x10c   : > { %vm1189_vm3 = vmxor %vm1125_vm11, %vm1992_vm5  ;;  %v1252_v18 = vsel %vm1188_vm14, %v466_v31, 1e+30  ;;  %v951_v2 = vmin.f32 %v949_v59, %v870_v40  ;;  %vm1122_vm2 = vcmp.eq.s32.totalorder %v1062_v58, 1  ;;  %v468_v59 = vld [vmem:[%s2588_s5 + $0x150] sm:$0xff] }
 0x10d   : > { %v1253_v21 = vsel %vm1189_vm3, %v467_v53, 1e+30  ;;  %v1294_v23 = vmin.f32 %v1292_v42, %v1252_v18  ;;  %v700_v25 = vpop.permute.xlu1 %699  ;;  %vm1182_vm15 = vmxor %vm1122_vm2, %vm1987_vm4 }
 0x10e   : > { %v1331_v33 = vmin.f32 %v1329_v0, %v1253_v21  ;;  %vm750_vm13 = vcmp.eq.s32.totalorder %v700_v25, 1  ;;  %vm1183_vm8 = vmxor %vm1122_vm2, %vm1992_vm5  ;;  %v1246_v19 = vsel %vm1182_vm15, %v460_v13, 1e+30 }
 0x10f   : > { %vm815_vm9 = vmxor %vm750_vm13, %vm2028_vm12  ;;  %v1247_v29 = vsel %vm1183_vm8, %v461_v17, 1e+30  ;;  %v1291_v45 = vmin.f32 %v1289_v10, %v1246_v19  ;;  %v691_v57 = vpop.permute.xlu0 %690 }
 0x110   : > { %vm816_vm7 = vmxor %vm750_vm13, %vm2033_vm0  ;;  %v879_v3 = vsel %vm815_vm9, %v470_v24, 1e+30  ;;  %v1328_v11 = vmin.f32 %v1326_v16, %v1247_v29  ;;  %vm747_vm10 = vcmp.eq.s32.totalorder %v691_v57, 1  ;;  %v479_v16 = vld [vmem:[%s2588_s5 + $0x1a8] sm:$0xff] }
 0x111   : > { %v880_v51 = vsel %vm816_vm7, %v471_v39, 1e+30  ;;  %v919_v5 = vmin.f32 %v917_v56, %v879_v3  ;;  %v1077_v12 = vpop.permute.xlu1 %1076  ;;  %vm809_vm1 = vmxor %vm747_vm10, %vm2028_vm12  ;;  %v469_v56 = vld [vmem:[%s2588_s5 + $0x158] sm:$0xff]  ;;  %v472_v3 = vld [vmem:[%s2588_s5 + $0x170] sm:$0xff] }
 0x112   : > { %v956_v20 = vmin.f32 %v954_v4, %v880_v51  ;;  %vm1127_vm11 = vcmp.eq.s32.totalorder %v1077_v12, 1  ;;  %vm810_vm6 = vmxor %vm747_vm10, %vm2033_vm0  ;;  %v873_v14 = vsel %vm809_vm1, %v464_v41, 1e+30  ;;  %v473_v12 = vld [vmem:[%s2588_s5 + $0x178] sm:$0xff] }
 0x113   : > { %vm1192_vm14 = vmxor %vm1127_vm11, %vm1987_vm4  ;;  %v874_v37 = vsel %vm810_vm6, %v465_v60, 1e+30  ;;  %v916_v9 = vmin.f32 %v914_v47, %v873_v14  ;;  %v1068_v35 = vpop.permute.xlu0 %1067 }
 0x114   : > { %vm1193_vm3 = vmxor %vm1127_vm11, %vm1992_vm5  ;;  %v1256_v30 = vsel %vm1192_vm14, %v470_v24, 1e+30  ;;  %v953_v42 = vmin.f32 %v951_v2, %v874_v37  ;;  %vm1124_vm2 = vcmp.eq.s32.totalorder %v1068_v35, 1 }
 0x115   : > { %v1257_v6 = vsel %vm1193_vm3, %v471_v39, 1e+30  ;;  %v1296_v46 = vmin.f32 %v1294_v23, %v1256_v30  ;;  %v706_v61 = vpop.permute.xlu1 %705  ;;  %vm1186_vm15 = vmxor %vm1124_vm2, %vm1987_vm4 }
 0x116   : > { %v1333_v15 = vmin.f32 %v1331_v33, %v1257_v6  ;;  %vm752_vm13 = vcmp.eq.s32.totalorder %v706_v61, 1  ;;  %vm1187_vm8 = vmxor %vm1124_vm2, %vm1992_vm5  ;;  %v1250_v53 = vsel %vm1186_vm15, %v464_v41, 1e+30 }
 0x117   : > { %vm819_vm9 = vmxor %vm752_vm13, %vm2028_vm12  ;;  %v1251_v55 = vsel %vm1187_vm8, %v465_v60, 1e+30  ;;  %v1293_v32 = vmin.f32 %v1291_v45, %v1250_v53  ;;  %v697_v62 = vpop.permute.xlu0 %696  ;;  %v482_v45 = vld [vmem:[%s2588_s5 + $0x1c0] sm:$0xff]  ;;  %v483_v60 = vld [vmem:[%s2588_s5 + $0x1c8] sm:$0xff] }
 0x118   : > { %vm820_vm7 = vmxor %vm752_vm13, %vm2033_vm0  ;;  %v883_v31 = vsel %vm819_vm9, %v474_v26, 1e+30  ;;  %v1330_v36 = vmin.f32 %v1328_v11, %v1251_v55  ;;  %vm749_vm10 = vcmp.eq.s32.totalorder %v697_v62, 1 }
 0x119   : > { %v884_v38 = vsel %vm820_vm7, %v475_v48, 1e+30  ;;  %v921_v43 = vmin.f32 %v919_v5, %v883_v31  ;;  %v1083_v0 = vpop.permute.xlu1 %1082  ;;  %vm813_vm1 = vmxor %vm749_vm10, %vm2028_vm12  ;;  %vm532_vm7 = vcmask 0   ;;  %v476_v31 = vld [vmem:[%s2588_s5 + $0x190] sm:$0xff] }
 0x11a   : > { %v958_v54 = vmin.f32 %v956_v20, %v884_v38  ;;  %vm1129_vm11 = vcmp.eq.s32.totalorder %v1083_v0, 1  ;;  %vm814_vm6 = vmxor %vm749_vm10, %vm2033_vm0  ;;  %v877_v13 = vsel %vm813_vm1, %v468_v59, 1e+30  ;;  %v477_v0 = vld [vmem:[%s2588_s5 + $0x198] sm:$0xff] }
 0x11b   : > { %vm1196_vm14 = vmxor %vm1129_vm11, %vm1987_vm4  ;;  %v878_v17 = vsel %vm814_vm6, %v469_v56, 1e+30  ;;  %v918_v18 = vmin.f32 %v916_v9, %v877_v13  ;;  %v1074_v21 = vpop.permute.xlu0 %1073 }
 0x11c   : > { %vm1197_vm3 = vmxor %vm1129_vm11, %vm1992_vm5  ;;  %v1260_v63 = vsel %vm1196_vm14, %v474_v26, 1e+30  ;;  %v955_v23 = vmin.f32 %v953_v42, %v878_v17  ;;  %vm1126_vm2 = vcmp.eq.s32.totalorder %v1074_v21, 1 }
 0x11d   : > { %v1261_v1 = vsel %vm1197_vm3, %v475_v48, 1e+30  ;;  %v1298_v4 = vmin.f32 %v1296_v46, %v1260_v63  ;;  %v712_v10 = vpop.permute.xlu1 %711  ;;  %vm1190_vm8 = vmxor %vm1126_vm2, %vm1987_vm4  ;;  %s1549_s11 = spop %1548 }
 0x11e   : > { %v1335_v50 = vmin.f32 %v1333_v15, %v1261_v1  ;;  %vm754_vm13 = vcmp.eq.s32.totalorder %v712_v10, 1  ;;  %vm1191_vm11 = vmxor %vm1126_vm2, %vm1992_vm5  ;;  %v1254_v39 = vsel %vm1190_vm8, %v468_v59, 1e+30  ;;  %v531_v40 = vstv %s1549_s11 }
 0x11f   : > { %vm823_vm9 = vmxor %vm754_vm13, %vm2028_vm12  ;;  %v1255_v58 = vsel %vm1191_vm11, %v469_v56, 1e+30  ;;  %v1295_v2 = vmin.f32 %v1293_v32, %v1254_v39  ;;  %533 = vst.msk [vmem:[%s356_s10] sm:$0x1] %vm532_vm7, %v531_v40  ;;  %v703_v51 = vpop.permute.xlu0 %702  ;;  %v486_v32 = vld [vmem:[%s2588_s5 + $0x1e0] sm:$0xff]  ;;  %v487_v56 = vld [vmem:[%s2588_s5 + $0x1e8] sm:$0xff] }
 0x120   : > { %vm824_vm15 = vmxor %vm754_vm13, %vm2033_vm0  ;;  %v887_v24 = vsel %vm823_vm9, %v478_v7, 1e+30  ;;  %v1332_v5 = vmin.f32 %v1330_v36, %v1255_v58  ;;  %vm751_vm3 = vcmp.eq.s32.totalorder %v703_v51, 1 }
 0x121   : > { %v888_v25 = vsel %vm824_vm15, %v479_v16, 1e+30  ;;  %v923_v28 = vmin.f32 %v921_v43, %v887_v24  ;;  %v1089_v33 = vpop.permute.xlu1 %1088  ;;  %vm817_vm6 = vmxor %vm751_vm3, %vm2028_vm12  ;;  %v480_v24 = vld [vmem:[%s2588_s5 + $0x1b0] sm:$0xff] }
 0x122   : > { %v960_v47 = vmin.f32 %v958_v54, %v888_v25  ;;  %vm1131_vm14 = vcmp.eq.s32.totalorder %v1089_v33, 1  ;;  %vm818_vm13 = vmxor %vm751_vm3, %vm2033_vm0  ;;  %v881_v57 = vsel %vm817_vm6, %v472_v3, 1e+30  ;;  %v481_v33 = vld [vmem:[%s2588_s5 + $0x1b8] sm:$0xff] }
 0x123   : > { %vm1200_vm10 = vmxor %vm1131_vm14, %vm1987_vm4  ;;  %v882_v30 = vsel %vm818_vm13, %v473_v12, 1e+30  ;;  %v920_v6 = vmin.f32 %v918_v18, %v881_v57  ;;  %v1080_v46 = vpop.permute.xlu0 %1079  ;;  %v1573_v57 = vld [vmem:[%s1702_s25] sm:$0x3] }
 0x124   : > { %vm1201_vm1 = vmxor %vm1131_vm14, %vm1992_vm5  ;;  %v1264_v19 = vsel %vm1200_vm10, %v478_v7, 1e+30  ;;  %v957_v26 = vmin.f32 %v955_v23, %v882_v30  ;;  %vm1128_vm15 = vcmp.eq.s32.totalorder %v1080_v46, 1  ;;  %v485_v30 = vld [vmem:[%s2588_s5 + $0x1d8] sm:$0xff] }
 0x125   : > { %v1265_v20 = vsel %vm1201_vm1, %v479_v16, 1e+30  ;;  %v1300_v29 = vmin.f32 %v1298_v4, %v1264_v19  ;;  %v718_v41 = vpop.permute.xlu1 %717  ;;  %vm1194_vm11 = vmxor %vm1128_vm15, %vm1987_vm4 }
 0x126   : > { %v1337_v11 = vmin.f32 %v1335_v50, %v1265_v20  ;;  %vm756_vm9 = vcmp.eq.s32.totalorder %v718_v41, 1  ;;  %vm1195_vm14 = vmxor %vm1128_vm15, %vm1992_vm5  ;;  %v1258_v37 = vsel %vm1194_vm11, %v472_v3, 1e+30 }
 0x127   : > { %vm827_vm2 = vmxor %vm756_vm9, %vm2028_vm12  ;;  %v1259_v35 = vsel %vm1195_vm14, %v473_v12, 1e+30  ;;  %v1297_v42 = vmin.f32 %v1295_v2, %v1258_v37  ;;  %v709_v38 = vpop.permute.xlu0 %708 }
 0x128   : > { %vm828_vm8 = vmxor %vm756_vm9, %vm2033_vm0  ;;  %v891_v61 = vsel %vm827_vm2, %v482_v45, 1e+30  ;;  %v1334_v43 = vmin.f32 %v1332_v5, %v1259_v35  ;;  %vm753_vm1 = vcmp.eq.s32.totalorder %v709_v38, 1 }
 0x129   : > { %v892_v14 = vsel %vm828_vm8, %v483_v60, 1e+30  ;;  %v925_v15 = vmin.f32 %v923_v28, %v891_v61  ;;  %v1095_v48 = vpop.permute.xlu1 %1094  ;;  %vm821_vm13 = vmxor %vm753_vm1, %vm2028_vm12 }
 0x12a   : > { %v962_v9 = vmin.f32 %v960_v47, %v892_v14  ;;  %vm1133_vm10 = vcmp.eq.s32.totalorder %v1095_v48, 1  ;;  %vm822_vm9 = vmxor %vm753_vm1, %vm2033_vm0  ;;  %v885_v62 = vsel %vm821_vm13, %v476_v31, 1e+30 }
 0x12b   : > { %vm1204_vm3 = vmxor %vm1133_vm10, %vm1987_vm4  ;;  %v886_v63 = vsel %vm822_vm9, %v477_v0, 1e+30  ;;  %v922_v1 = vmin.f32 %v920_v6, %v885_v62  ;;  %v1086_v4 = vpop.permute.xlu0 %1085 }
 0x12c   : > { %vm1205_vm6 = vmxor %vm1133_vm10, %vm1992_vm5  ;;  %v1268_v53 = vsel %vm1204_vm3, %v482_v45, 1e+30  ;;  %v959_v7 = vmin.f32 %v957_v26, %v886_v63  ;;  %vm1130_vm8 = vcmp.eq.s32.totalorder %v1086_v4, 1  ;;  %v484_v45 = vld [vmem:[%s2588_s5 + $0x1d0] sm:$0xff] }
 0x12d   : > { %v1269_v54 = vsel %vm1205_vm6, %v483_v60, 1e+30  ;;  %v1302_v55 = vmin.f32 %v1300_v29, %v1268_v53  ;;  %v724_v59 = vpop.permute.xlu1 %723  ;;  %vm1198_vm14 = vmxor %vm1130_vm8, %vm1987_vm4 }
 0x12e   : > { %v1339_v36 = vmin.f32 %v1337_v11, %v1269_v54  ;;  %vm758_vm2 = vcmp.eq.s32.totalorder %v724_v59, 1  ;;  %vm1199_vm10 = vmxor %vm1130_vm8, %vm1992_vm5  ;;  %v1262_v17 = vsel %vm1198_vm14, %v476_v31, 1e+30  ;;  %v1544_v11 = vmul.f32 -1.442695, %v1573_v57  ;;  %v489_v31 = vld [vmem:[%s2588_s5 + $0x1f8] sm:$0xff] }
 0x12f   : > { %vm831_vm15 = vmxor %vm758_vm2, %vm2028_vm12  ;;  %v1263_v21 = vsel %vm1199_vm10, %v477_v0, 1e+30  ;;  %v1299_v23 = vmin.f32 %v1297_v42, %v1262_v17  ;;  %v715_v25 = vpop.permute.xlu0 %714 }
 0x130   : > { %vm832_vm11 = vmxor %vm758_vm2, %vm2033_vm0  ;;  %v895_v10 = vsel %vm831_vm15, %v486_v32, 1e+30  ;;  %v1336_v28 = vmin.f32 %v1334_v43, %v1263_v21  ;;  %vm755_vm6 = vcmp.eq.s32.totalorder %v715_v25, 1  ;;  %1569 = vpow2.f32 %v1544_v11 }
 0x131   : > { %v896_v13 = vsel %vm832_vm11, %v487_v56, 1e+30  ;;  %v2514_v50 = vmin.f32 %v925_v15, %v895_v10  ;;  %v1101_v16 = vpop.permute.xlu1 %1100  ;;  %vm825_vm9 = vmxor %vm755_vm6, %vm2028_vm12 }
 0x132   : > { %v2518_v18 = vmin.f32 %v962_v9, %v896_v13  ;;  %vm1135_vm3 = vcmp.eq.s32.totalorder %v1101_v16, 1  ;;  %vm826_vm2 = vmxor %vm755_vm6, %vm2033_vm0  ;;  %v889_v58 = vsel %vm825_vm9, %v480_v24, 1e+30  ;;  %v488_v9 = vld [vmem:[%s2588_s5 + $0x1f0] sm:$0xff] }
 0x133   : > { %vm1208_vm1 = vmxor %vm1135_vm3, %vm1987_vm4  ;;  %v890_v3 = vsel %vm826_vm2, %v481_v33, 1e+30  ;;  %v924_v51 = vmin.f32 %v922_v1, %v889_v58  ;;  %v1092_v5 = vpop.permute.xlu0 %1091 }
 0x134   : > { %vm1209_vm13 = vmxor %vm1135_vm3, %vm1992_vm5  ;;  %v1272_v39 = vsel %vm1208_vm1, %v486_v32, 1e+30  ;;  %v961_v12 = vmin.f32 %v959_v7, %v890_v3  ;;  %vm1132_vm15 = vcmp.eq.s32.totalorder %v1092_v5, 1  ;;  %v1599_v3 = vmov 1966171168  }
 0x135   : > { %v1273_v40 = vsel %vm1209_vm13, %v487_v56, 1e+30  ;;  %v1304_v47 = vmin.f32 %v1302_v55, %v1272_v39  ;;  %vm1202_vm8 = vmxor %vm1132_vm15, %vm1987_vm4 }
 0x136   : > { %v1341_v2 = vmin.f32 %v1339_v36, %v1273_v40  ;;  %vm1203_vm11 = vmxor %vm1132_vm15, %vm1992_vm5  ;;  %v1266_v19 = vsel %vm1202_vm8, %v480_v24, 1e+30 }
 0x137   : > { %v1267_v20 = vsel %vm1203_vm11, %v481_v33, 1e+30  ;;  %v1301_v29 = vmin.f32 %v1299_v23, %v1266_v19  ;;  %v721_v41 = vpop.permute.xlu0 %720 }
 0x138   : > { %v1338_v60 = vmin.f32 %v1336_v28, %v1267_v20  ;;  %vm757_vm14 = vcmp.eq.s32.totalorder %v721_v41, 1 }
 0x139   : > { %vm829_vm10 = vmxor %vm757_vm14, %vm2028_vm12 }
 0x13a   : > { %vm830_vm3 = vmxor %vm757_vm14, %vm2033_vm0  ;;  %v893_v6 = vsel %vm829_vm10, %v484_v45, 1e+30  ;;  %v1570_v32 = vpop.eup %1569  ;;  %vm2625_vm10 = vcmask 1040384  }
 0x13b   : > { %v894_v46 = vsel %vm830_vm3, %v485_v30, 1e+30  ;;  %v926_v26 = vmin.f32 %v924_v51, %v893_v6  ;;  %v1098_v61 = vpop.permute.xlu0 %1097  ;;  %v1357_v7 = vadd.f32 1.0, %v1570_v32  ;;  %v1368_v51 = vunpack.c.l.s4 %v1599_v3  ;;  %v1574_v6 = vld [vmem:[%s1824_s30] sm:$0x3]  ;;  %vm2626_vm3 = vmmov %vm2625_vm10 }
 0x13c   : > { %v963_v14 = vmin.f32 %v961_v12, %v894_v46  ;;  %vm1134_vm1 = vcmp.eq.s32.totalorder %v1098_v61, 1 }
 0x13d   : > { %vm1206_vm6 = vmxor %vm1134_vm1, %vm1987_vm4  ;;  %1571 = vrcp.f32 %v1357_v7  ;;  %v1369_v20 = vunpack.c.0.s8 %v1368_v51 }
 0x13e   : > { %vm1207_vm13 = vmxor %vm1134_vm1, %vm1992_vm5  ;;  %v1270_v15 = vsel %vm1206_vm6, %v484_v45, 1e+30 }
 0x13f   : > { %v1271_v48 = vsel %vm1207_vm13, %v485_v30, 1e+30  ;;  %v1303_v37 = vmin.f32 %v1301_v29, %v1270_v15  ;;  %v727_v35 = vpop.permute.xlu0 %726 }
 0x140   : > { %v1340_v42 = vmin.f32 %v1338_v60, %v1271_v48  ;;  %vm759_vm9 = vcmp.eq.s32.totalorder %v727_v35, 1 }
 0x141   : > { %vm833_vm2 = vmxor %vm759_vm9, %vm2028_vm12 }
 0x142   : > { %vm834_vm15 = vmxor %vm759_vm9, %vm2033_vm0  ;;  %v897_v38 = vsel %vm833_vm2, %v488_v9, 1e+30 }
 0x143   : > { %v898_v43 = vsel %vm834_vm15, %v489_v31, 1e+30  ;;  %v928_v0 = vmin.f32 %v926_v26, %v897_v38  ;;  %v1104_v53 = vpop.permute.xlu0 %1103  ;;  %v1372_v26 = vsub.s32 %v1369_v20, %v1930_v52 }
 0x144   : > { %v965_v54 = vmin.f32 %v963_v14, %v898_v43  ;;  %vm1136_vm8 = vcmp.eq.s32.totalorder %v1104_v53, 1 }
 0x145   : > { %v929_v55 = vmin.f32 %v2514_v50, %v928_v0  ;;  %vm1210_vm11 = vmxor %vm1136_vm8, %vm1987_vm4 }
 0x146   : > { %v966_v59 = vmin.f32 %v2518_v18, %v965_v54  ;;  %vm1211_vm12 = vmxor %vm1136_vm8, %vm1992_vm5  ;;  %v1274_v8 = vsel %vm1210_vm11, %v488_v9, 1e+30 }
 0x147   : > { %v930_v34 = vrot.slane %v929_v55, 4  ;;  %v1275_v62 = vsel %vm1211_vm12, %v489_v31, 1e+30  ;;  %v1305_v36 = vmin.f32 %v1303_v37, %v1274_v8  ;;  %v1572_v29 = vpop.eup %1571 }
 0x148   : > { %v967_v56 = vrot.slane %v966_v59, 4  ;;  %v1342_v63 = vmin.f32 %v1340_v42, %v1275_v62  ;;  %v1360_v46 = vsub.f32 %v1572_v29, %v1574_v6 }
 0x149   : > { %v931_v1 = vmin.f32 %v929_v55, %v930_v34  ;;  %v1306_v4 = vmin.f32 %v1304_v47, %v1305_v36 }
 0x14a   : > { %v968_v10 = vmin.f32 %v966_v59, %v967_v56  ;;  %v1343_v13 = vmin.f32 %v1341_v2, %v1342_v63  ;;  %v1361_v14 = vmul.f32 %v1360_v46, %v1360_v46 }
 0x14b   : > { %v932_v50 = vrot.slane %v931_v1, 2  ;;  %v1307_v44 = vrot.slane %v1306_v4, 4 }
 0x14c   : > { %v969_v16 = vrot.slane %v968_v10, 2  ;;  %v1344_v17 = vrot.slane %v1343_v13, 4 }
 0x14d   : > { %v933_v21 = vmin.f32 %v931_v1, %v932_v50  ;;  %v1308_v18 = vmin.f32 %v1306_v4, %v1307_v44 }
 0x14e   : > { %v970_v49 = vmin.f32 %v968_v10, %v969_v16  ;;  %v1345_v23 = vmin.f32 %v1343_v13, %v1344_v17 }
 0x14f   : > { %v934_v24 = vrot.slane %v933_v21, 1  ;;  %v1309_v25 = vrot.slane %v1308_v18, 2 }
 0x150   : > { %v971_v28 = vrot.slane %v970_v49, 1  ;;  %v1346_v33 = vrot.slane %v1345_v23, 2 }
 0x151   : > { %v935_v39 = vmin.f32 %v933_v21, %v934_v24  ;;  %v1310_v40 = vmin.f32 %v1308_v18, %v1309_v25 }
 0x152   : > { %v972_v58 = vmin.f32 %v970_v49, %v971_v28  ;;  %v1347_v47 = vmin.f32 %v1345_v23, %v1346_v33 }
 0x153   : > { %v1311_v2 = vrot.slane %v1310_v40, 1  ;;  %vm973_vm4 = vcmp.ge.f32.partialorder %v935_v39, 1e+30 }
 0x154   : > { %v1348_v5 = vrot.slane %v1347_v47, 1  ;;  %vm974_vm5 = vcmp.ge.f32.partialorder %v972_v58, 1e+30  ;;  %v975_v45 = vsel %vm973_vm4, 0.0, %v935_v39 }
 0x155   : > { %v1312_v12 = vmin.f32 %v1310_v40, %v1311_v2  ;;  %v976_v57 = vsel %vm974_vm5, 0.0, %v972_v58 }
 0x156   : > { %v1349_v19 = vmin.f32 %v1347_v47, %v1348_v5 }
 0x157   : > { %vm1350_vm0 = vcmp.ge.f32.partialorder %v1312_v12, 1e+30 }
 0x158   : > { %vm1351_vm14 = vcmp.ge.f32.partialorder %v1349_v19, 1e+30  ;;  %v1352_v41 = vsel %vm1350_vm0, 0.0, %v1312_v12 }
 0x159   : > { %v1353_v11 = vsel %vm1351_vm14, 0.0, %v1349_v19  ;;  %v1362_v60 = vadd.f32 %v1352_v41, %v975_v45 }
 0x15a   : > { %v1363_v30 = vadd.f32 %v1353_v11, %v976_v57 }
 0x15c   : > { %v1366_v61 = vcombine.low %v1362_v60, %v1363_v30 }
 0x15e   : > { %v1373_v15 = vrot.slane %v1366_v61, %v1372_v26 }
 0x160   : > { %v1380_v48 = vrot.slane %v1373_v15, %v1372_v26 }
 0x162   : > { %v1382_v37 = vmul.f32 %v1380_v48, %v1361_v14 }
 0x164   : > { %v1387_v9 = vrot.slane %v1382_v37, %v1937_v22  ;;  %v1391_v35 = vrot.slane %v1382_v37, %v1940_v27 }
 0x166   : > { %v1394_v42 = vsel %vm2625_vm10, %v1387_v9, 0.0  ;;  %v1395_v31 = vsel %vm2626_vm3, %v1391_v35, 0.0 }
 0x167   : > { %v1396_v38 = vadd.f32 %v1395_v31, %v1394_v42 }
 0x169   : > { %1397 = vadd.xlane.f32.xlu1 %v1396_v38 }
 0x1f6   : > { %v1398_v43 = vpop.xlane.xlu1 %1397 }
 0x1f7   : > { %v1399_v0 = vrot.slane %v1398_v43, 4 }
 0x1f9   : > { %v1400_v53 = vadd.f32 %v1399_v0, %v1398_v43 }
 0x1fb   : > { %v1401_v52 = vrot.slane %v1400_v53, 2 }
 0x1fd   : > { %v1402_v54 = vadd.f32 %v1401_v52, %v1400_v53 }
 0x1ff   : > { %v1403_v55 = vrot.slane %v1402_v54, 1 }
 0x201   : > { %v1404_v32 = vadd.f32 %v1403_v55, %v1402_v54 }
 0x203   : > { %1550 = vpush %v1404_v32 }
 0x234   : > { %s1551_s21 = spop %1550 }
 0x235   : > { %v1406_v22 = vstv %s1551_s21 }
 0x236   : > { %1407 = vst.msk [vmem:[%s359_s20] sm:$0x1] %vm532_vm7, %v1406_v22 }
 0x237 PF: > { %s24_s29 = sadd.s32 1, %s1595_s29  }
 0x238   : > { %p21_p11 = scmp.ge.s32.totalorder %s24_s29, 4  }
 0x23a   :  { %23 = sbr.rel (!%p21_p11) target bundleno = 16 (0x10), region = 91 }

</bundles_post_ra>
